<compile_context>
chip_gen: v5e
topology: v5e:2x2
jax: 0.10.0
libtpu: 0.0.40
codegen_flags: <defaults>
</compile_context>

<pallas_src>
import numpy as np
import jax
import jax.numpy as jnp
from jax.experimental import pallas as pl
from jax.experimental.pallas import tpu as pltpu


def _make_divisible(ch, divisor=8, min_ch=None):
    if min_ch is None:
        min_ch = divisor
    new_ch = max(min_ch, int(ch + divisor / 2) // divisor * divisor)
    if new_ch < 0.9 * ch:
        new_ch += divisor
    return new_ch


# ----------------------------- fused Pallas kernel ---------------------------

def _fused_dwse_kernel(xq_ref, w1_ref, b1_ref, a1_ref,
                       wdw_ref, b2_ref, a2_ref,
                       wfc1_ref, bfc1_ref, wfc2_ref, bfc2_ref,
                       wl_ref, b3_ref,
                       o_ref, ypad_ref):
    """One image per grid step.

    xq_ref  : (4*Ho*Wo, cin)   space-to-depth input, rows ordered [p=2*ph+pw, bh, bw]
    w1_ref  : (cin, G)         1x1 conv weight, BN1 scale folded in
    b1/a1   : (1, G)           BN1 shift / PReLU1 alpha
    wdw_ref : (9, 1, 1, G)     3x3 depthwise taps (kh*3+kw), BN2 scale folded in
    b2/a2   : (1, 1, G)        BN2 shift / PReLU2 alpha
    wfc1    : (G, S)   bfc1: (1, S)   wfc2: (S, G)   bfc2: (1, G)   (SqueezeExcitation)
    wl_ref  : (out_c, G)       1x1 linear conv weight (transposed), BN3 scale folded in
    b3_ref  : (out_c, 1)       BN3 shift
    o_ref   : (out_c, Ho*Wo)   channel-major output block (== NCHW-flat)
    ypad_ref: (4, Ho+1, Wo+1, G) zero-padded parity planes of the stage-1 output
    """
    P, Hq, Wq, G = ypad_ref.shape
    Ho, Wo = Hq - 1, Wq - 1
    M = Ho * Wo

    # ---- Stage 1: ConvBlock(in_c -> G, 1x1): conv (+folded BN scale) + shift + PReLU.
    y = jnp.dot(xq_ref[...], w1_ref[...], preferred_element_type=jnp.float32)
    y = y + b1_ref[...]
    y = jnp.where(y > 0, y, a1_ref[...] * y)                       # (4*M, G)

    # Scatter the 2x2 parity planes into a zero-padded VMEM scratch.  The zero
    # block row/col at index 0 is exactly the original 1-pixel zero padding of
    # the stride-2 / pad-1 depthwise conv.
    ypad_ref[...] = jnp.zeros_like(ypad_ref)
    ypad_ref[:, 1:, 1:, :] = y.reshape(P, Ho, Wo, G)

    # ---- Stage 2: ConvBlock(G, G, 3x3, stride=2, pad=1, groups=G).
    # After the parity split every tap is an UNSTRIDED static slice of the
    # padded scratch:  kernel index k -> (parity, slice start) along that axis.
    sel = ((1, 0), (0, 1), (1, 1))                                  # k -> (parity, start)
    wdw = wdw_ref[...]                                              # (9, 1, 1, G)
    acc = None
    for kh in range(3):
        ph, sh = sel[kh]
        for kw in range(3):
            pw, sw = sel[kw]
            tap = ypad_ref[2 * ph + pw, sh:sh + Ho, sw:sw + Wo, :]  # (Ho, Wo, G)
            term = tap * wdw[kh * 3 + kw]
            acc = term if acc is None else acc + term
    z = acc + b2_ref[...]
    z = jnp.where(z > 0, z, a2_ref[...] * z)
    z = z.reshape(M, G)                                             # (M, G)

    # ---- Stage 3: SqueezeExcitation (avg-pool -> fc1 -> relu -> fc2 -> hardsigmoid).
    pooled = jnp.sum(z, axis=0, keepdims=True) * (1.0 / M)          # (1, G)
    h = jnp.dot(pooled, wfc1_ref[...], preferred_element_type=jnp.float32)
    h = jnp.maximum(h + bfc1_ref[...], 0.0)                         # (1, S)
    s = jnp.dot(h, wfc2_ref[...], preferred_element_type=jnp.float32) + bfc2_ref[...]
    s = jnp.clip(s + 3.0, 0.0, 6.0) * (1.0 / 6.0)                   # hardsigmoid, (1, G)
    z = z * s                                                       # (M, G)

    # ---- Stage 4: LinearBlock(G -> out_c, 1x1) + BN, computed transposed so the
    # store is channel-major with the flattened spatial dim on the lane axis.
    out = jax.lax.dot_general(wl_ref[...], z, (((1,), (1,)), ((), ())),
                              preferred_element_type=jnp.float32)   # (out_c, M)
    o_ref[...] = out + b3_ref[...]


# ------------------------------ wrapper (plain JAX) ---------------------------

def _fold_bn(gamma, beta, mean, var, eps=1e-5):
    scale = gamma / jnp.sqrt(var + eps)
    shift = beta - mean * scale
    return scale, shift


def depthwise_se_forward(x_nchw, p):
    x = x_nchw.astype(jnp.float32)
    N, cin, H, W = x.shape
    G, out_c, S = int(p["groups"]), int(p["out_c"]), int(p["squeeze_c"])
    assert H % 2 == 0 and W % 2 == 0, "stride-2 block expects even H, W"
    Ho, Wo = H // 2, W // 2
    M = Ho * Wo

    # Fold BN (inference running stats) scale into the conv weights.
    s1, b1 = _fold_bn(*p["bn1"])
    s2, b2 = _fold_bn(*p["bn2"])
    s3, b3 = _fold_bn(*p["bn3"])
    w1s = p["w1"] * s1[None, :]                                   # (cin, G)
    wdws = (p["wdw"] * s2[None, None, :]).reshape(9, 1, 1, G)     # (9, 1, 1, G)
    wlts = (p["wl"] * s3[None, :]).T                              # (out_c, G)

    # Space-to-depth of the INPUT only (1x data movement of the smallest tensor):
    # xq rows are ordered [parity p = 2*ph + pw, block row bh, block col bw].
    xq = jnp.transpose(x, (0, 2, 3, 1)).reshape(N, Ho, 2, Wo, 2, cin)
    xq = jnp.transpose(xq, (0, 2, 4, 1, 3, 5)).reshape(N, 4 * M, cin)

    def _rep(shape):  # replicated (grid-invariant) full-array operand
        return pl.BlockSpec(shape, lambda *_: (0,) * len(shape))

    out = pl.pallas_call(
        _fused_dwse_kernel,
        out_shape=jax.ShapeDtypeStruct((N, out_c, M), jnp.float32),
        grid=(N,),
        in_specs=[
            pl.BlockSpec((None, 4 * M, cin), lambda n: (n, 0, 0)),   # xq (per image)
            _rep((cin, G)), _rep((1, G)), _rep((1, G)),              # w1s, shift1, alpha1
            _rep((9, 1, 1, G)), _rep((1, 1, G)), _rep((1, 1, G)),    # wdws, shift2, alpha2
            _rep((G, S)), _rep((1, S)), _rep((S, G)), _rep((1, G)),  # SE fc1 / fc2
            _rep((out_c, G)), _rep((out_c, 1)),                      # wlts, shift3
        ],
        out_specs=pl.BlockSpec((None, out_c, M), lambda n: (n, 0, 0)),
        scratch_shapes=[pltpu.VMEM((4, Ho + 1, Wo + 1, G), jnp.float32)],
        compiler_params=pltpu.CompilerParams(
            dimension_semantics=("parallel",),
            vmem_limit_bytes=32 * 1024 * 1024),
    )(xq, w1s, b1.reshape(1, G), p["alpha1"].reshape(1, G),
      wdws, b2.reshape(1, 1, G), p["alpha2"].reshape(1, 1, G),
      p["wfc1"], p["bfc1"].reshape(1, S), p["wfc2"], p["bfc2"].reshape(1, G),
      wlts, b3.reshape(out_c, 1))

    # Output is already channel-major (N, out_c, Ho*Wo) == NCHW-flat.
    return out.reshape(N, out_c, Ho, Wo)


# ------------------------------ parameters ------------------------------------

def make_params(key, in_c, out_c, groups):
    squeeze_c = _make_divisible(groups // 4, 8)
    ks = jax.random.split(key, 12)

    def nrm(k, shape, s=0.3):
        return jax.random.normal(k, shape, jnp.float32) * s

    def bn(k, c):
        k1, k2, k3, k4 = jax.random.split(k, 4)
        gamma = 1.0 + 0.1 * jax.random.normal(k1, (c,), jnp.float32)
        beta = 0.1 * jax.random.normal(k2, (c,), jnp.float32)
        mean = 0.1 * jax.random.normal(k3, (c,), jnp.float32)
        var = jax.random.uniform(k4, (c,), jnp.float32, 0.5, 1.5)
        return gamma, beta, mean, var

    p = {"groups": groups, "out_c": out_c, "squeeze_c": squeeze_c}
    p["w1"] = nrm(ks[0], (in_c, groups))                 # Conv2d(in_c, G, 1x1), no bias
    p["bn1"] = bn(ks[1], groups)
    p["alpha1"] = 0.25 + 0.05 * jax.random.normal(ks[2], (groups,), jnp.float32)
    p["wdw"] = nrm(ks[3], (3, 3, groups))                # depthwise Conv2d(G, G, 3x3)
    p["bn2"] = bn(ks[4], groups)
    p["alpha2"] = 0.25 + 0.05 * jax.random.normal(ks[5], (groups,), jnp.float32)
    p["wfc1"] = nrm(ks[6], (groups, squeeze_c))          # SE fc1 (with bias)
    p["bfc1"] = nrm(ks[7], (squeeze_c,), 0.1)
    p["wfc2"] = nrm(ks[8], (squeeze_c, groups))          # SE fc2 (with bias)
    p["bfc2"] = nrm(ks[9], (groups,), 0.1)
    p["wl"] = nrm(ks[10], (groups, out_c))               # LinearBlock Conv2d(G, out_c, 1x1)
    p["bn3"] = bn(ks[11], out_c)
    return p


# ------------------------- pure-JAX reference (NCHW) ---------------------------

def reference_forward(x_nchw, p, eps=1e-5):
    dn = ("NCHW", "OIHW", "NCHW")
    hp = jax.lax.Precision.HIGHEST

    def bn(y, stats):
        g, b, m, v = stats
        sc = (g / jnp.sqrt(v + eps))[None, :, None, None]
        return (y - m[None, :, None, None]) * sc + b[None, :, None, None]

    def prelu(y, a):
        return jnp.where(y > 0, y, a[None, :, None, None] * y)

    G = p["groups"]
    w1 = jnp.transpose(p["w1"])[:, :, None, None]
    y = jax.lax.conv_general_dilated(x_nchw, w1, (1, 1), "VALID",
                                     dimension_numbers=dn, precision=hp)
    y = prelu(bn(y, p["bn1"]), p["alpha1"])

    wdw = jnp.transpose(p["wdw"], (2, 0, 1))[:, None, :, :]
    y = jax.lax.conv_general_dilated(y, wdw, (2, 2), ((1, 1), (1, 1)),
                                     dimension_numbers=dn,
                                     feature_group_count=G, precision=hp)
    y = prelu(bn(y, p["bn2"]), p["alpha2"])

    pooled = jnp.mean(y, axis=(2, 3), keepdims=True)
    wfc1 = jnp.transpose(p["wfc1"])[:, :, None, None]
    h = jax.lax.conv_general_dilated(pooled, wfc1, (1, 1), "VALID",
                                     dimension_numbers=dn, precision=hp)
    h = jnp.maximum(h + p["bfc1"][None, :, None, None], 0.0)
    wfc2 = jnp.transpose(p["wfc2"])[:, :, None, None]
    s = jax.lax.conv_general_dilated(h, wfc2, (1, 1), "VALID",
                                     dimension_numbers=dn, precision=hp)
    s = s + p["bfc2"][None, :, None, None]
    s = jnp.clip(s + 3.0, 0.0, 6.0) / 6.0
    y = y * s

    wl = jnp.transpose(p["wl"])[:, :, None, None]
    y = jax.lax.conv_general_dilated(y, wl, (1, 1), "VALID",
                                     dimension_numbers=dn, precision=hp)
    return bn(y, p["bn3"])


if __name__ == "__main__":
    key = jax.random.PRNGKey(0)
    kx, kp = jax.random.split(key)
    N, in_c, H, W = 2, 4, 16, 16
    groups, out_c = 16, 8     # depthwise width = groups, as in the module

    x = jax.random.normal(kx, (N, in_c, H, W), jnp.float32)
    params = make_params(kp, in_c, out_c, groups)

    out = jax.block_until_ready(depthwise_se_forward(x, params))

    ref = reference_forward(x, params)
    np.testing.assert_allclose(np.asarray(out), np.asarray(ref), rtol=1e-2, atol=1e-2)
    assert out.shape == (N, out_c, H // 2, W // 2)
    print("KERNEL_OK")
</pallas_src>

<mosaic_0001>
module attributes {stable_mosaic.version = 11 : i64} {
  func.func @_fused_dwse_kernel(%arg0: i32, %arg1: memref<1x256x4xf32, #tpu.memory_space<vmem>>, %arg2: memref<4x16xf32, #tpu.memory_space<vmem>>, %arg3: memref<1x16xf32, #tpu.memory_space<vmem>>, %arg4: memref<1x16xf32, #tpu.memory_space<vmem>>, %arg5: memref<9x1x1x16xf32, #tpu.memory_space<vmem>>, %arg6: memref<1x1x16xf32, #tpu.memory_space<vmem>>, %arg7: memref<1x1x16xf32, #tpu.memory_space<vmem>>, %arg8: memref<16x8xf32, #tpu.memory_space<vmem>>, %arg9: memref<1x8xf32, #tpu.memory_space<vmem>>, %arg10: memref<8x16xf32, #tpu.memory_space<vmem>>, %arg11: memref<1x16xf32, #tpu.memory_space<vmem>>, %arg12: memref<8x16xf32, #tpu.memory_space<vmem>>, %arg13: memref<8x1xf32, #tpu.memory_space<vmem>>, %arg14: memref<1x8x64xf32, #tpu.memory_space<vmem>>, %arg15: memref<4x9x9x16xf32, #tpu.memory_space<vmem>>) attributes {dimension_semantics = [#tpu.dimension_semantics<parallel>], iteration_bounds = array<i64: 2>, scalar_prefetch = 0 : i64, scratch_operands = 1 : i64, tpu.core_type = #tpu.core_type<tc>, window_params = [{transform_indices = @transform_0, window_bounds = array<i64: 1, 256, 4>}, {pipeline_mode = #tpu.pipeline_mode<synchronous>, transform_indices = @transform_1, window_bounds = array<i64: 4, 16>}, {pipeline_mode = #tpu.pipeline_mode<synchronous>, transform_indices = @transform_2, window_bounds = array<i64: 1, 16>}, {pipeline_mode = #tpu.pipeline_mode<synchronous>, transform_indices = @transform_3, window_bounds = array<i64: 1, 16>}, {pipeline_mode = #tpu.pipeline_mode<synchronous>, transform_indices = @transform_4, window_bounds = array<i64: 9, 1, 1, 16>}, {pipeline_mode = #tpu.pipeline_mode<synchronous>, transform_indices = @transform_5, window_bounds = array<i64: 1, 1, 16>}, {pipeline_mode = #tpu.pipeline_mode<synchronous>, transform_indices = @transform_6, window_bounds = array<i64: 1, 1, 16>}, {pipeline_mode = #tpu.pipeline_mode<synchronous>, transform_indices = @transform_7, window_bounds = array<i64: 16, 8>}, {pipeline_mode = #tpu.pipeline_mode<synchronous>, transform_indices = @transform_8, window_bounds = array<i64: 1, 8>}, {pipeline_mode = #tpu.pipeline_mode<synchronous>, transform_indices = @transform_9, window_bounds = array<i64: 8, 16>}, {pipeline_mode = #tpu.pipeline_mode<synchronous>, transform_indices = @transform_10, window_bounds = array<i64: 1, 16>}, {pipeline_mode = #tpu.pipeline_mode<synchronous>, transform_indices = @transform_11, window_bounds = array<i64: 8, 16>}, {pipeline_mode = #tpu.pipeline_mode<synchronous>, transform_indices = @transform_12, window_bounds = array<i64: 8, 1>}, {transform_indices = @transform_13, window_bounds = array<i64: 1, 8, 64>}]} {
    %c0 = arith.constant 0 : index
    %c0_0 = arith.constant 0 : index
    %c0_1 = arith.constant 0 : index
    %0 = vector.load %arg1[%c0, %c0_0, %c0_1] : memref<1x256x4xf32, #tpu.memory_space<vmem>>, vector<1x256x4xf32>
    %1 = vector.shape_cast %0 : vector<1x256x4xf32> to vector<256x4xf32>
    %c0_2 = arith.constant 0 : index
    %c0_3 = arith.constant 0 : index
    %2 = vector.load %arg2[%c0_2, %c0_3] : memref<4x16xf32, #tpu.memory_space<vmem>>, vector<4x16xf32>
    %cst = arith.constant dense<0.000000e+00> : vector<256x16xf32>
    %3 = tpu.matmul %1, %2, %cst {dimension_numbers = #tpu.dot_dimension_numbers<[1], [0], [0], [1], [0, 0, 1, 1], [], []>} : vector<256x4xf32>, vector<4x16xf32>, vector<256x16xf32> -> vector<256x16xf32>
    %c0_4 = arith.constant 0 : index
    %c0_5 = arith.constant 0 : index
    %4 = vector.load %arg3[%c0_4, %c0_5] : memref<1x16xf32, #tpu.memory_space<vmem>>, vector<1x16xf32>
    %5 = vector.broadcast %4 : vector<1x16xf32> to vector<256x16xf32>
    %6 = arith.addf %3, %5 : vector<256x16xf32>
    %cst_6 = arith.constant 0.000000e+00 : f32
    %7 = vector.broadcast %cst_6 : f32 to vector<256x16xf32>
    %8 = arith.cmpf ogt, %6, %7 : vector<256x16xf32>
    %c0_7 = arith.constant 0 : index
    %c0_8 = arith.constant 0 : index
    %9 = vector.load %arg4[%c0_7, %c0_8] : memref<1x16xf32, #tpu.memory_space<vmem>>, vector<1x16xf32>
    %10 = vector.broadcast %9 : vector<1x16xf32> to vector<256x16xf32>
    %11 = arith.mulf %10, %6 : vector<256x16xf32>
    %12 = arith.select %8, %6, %11 : vector<256x16xi1>, vector<256x16xf32>
    %cst_9 = arith.constant 0.000000e+00 : f32
    %13 = vector.broadcast %cst_9 : f32 to vector<4x9x9x16xf32>
    %c0_10 = arith.constant 0 : index
    %c0_11 = arith.constant 0 : index
    %c0_12 = arith.constant 0 : index
    %c0_13 = arith.constant 0 : index
    %14 = vector.load %arg15[%c0_10, %c0_11, %c0_12, %c0_13] : memref<4x9x9x16xf32, #tpu.memory_space<vmem>>, vector<4x9x9x16xf32>
    tpu.vector_store %arg15[%c0_10, %c0_11, %c0_12, %c0_13], %13 {strides = array<i32>} : memref<4x9x9x16xf32, #tpu.memory_space<vmem>>, vector<4x9x9x16xf32>,
    %15 = vector.shape_cast %12 : vector<256x16xf32> to vector<4x8x8x16xf32>
    %c0_14 = arith.constant 0 : index
    %c1 = arith.constant 1 : index
    %c1_15 = arith.constant 1 : index
    %c0_16 = arith.constant 0 : index
    %16 = vector.load %arg15[%c0_14, %c1, %c1_15, %c0_16] : memref<4x9x9x16xf32, #tpu.memory_space<vmem>>, vector<4x8x8x16xf32>
    tpu.vector_store %arg15[%c0_14, %c1, %c1_15, %c0_16], %15 {strides = array<i32>} : memref<4x9x9x16xf32, #tpu.memory_space<vmem>>, vector<4x8x8x16xf32>,
    %c0_17 = arith.constant 0 : index
    %c0_18 = arith.constant 0 : index
    %c0_19 = arith.constant 0 : index
    %c0_20 = arith.constant 0 : index
    %17 = vector.load %arg5[%c0_17, %c0_18, %c0_19, %c0_20] : memref<9x1x1x16xf32, #tpu.memory_space<vmem>>, vector<9x1x1x16xf32>
    %c3 = arith.constant 3 : index
    %c0_21 = arith.constant 0 : index
    %c0_22 = arith.constant 0 : index
    %c0_23 = arith.constant 0 : index
    %18 = vector.load %arg15[%c3, %c0_21, %c0_22, %c0_23] : memref<4x9x9x16xf32, #tpu.memory_space<vmem>>, vector<1x8x8x16xf32>
    %19 = vector.shape_cast %18 : vector<1x8x8x16xf32> to vector<8x8x16xf32>
    %20 = vector.extract_strided_slice %17 {offsets = [0, 0, 0, 0], sizes = [1, 1, 1, 16], strides = [1, 1, 1, 1]} : vector<9x1x1x16xf32> to vector<1x1x1x16xf32>
    %21 = vector.shape_cast %20 : vector<1x1x1x16xf32> to vector<1x1x16xf32>
    %22 = vector.broadcast %21 : vector<1x1x16xf32> to vector<8x8x16xf32>
    %23 = arith.mulf %19, %22 : vector<8x8x16xf32>
    %c2 = arith.constant 2 : index
    %c0_24 = arith.constant 0 : index
    %c1_25 = arith.constant 1 : index
    %c0_26 = arith.constant 0 : index
    %24 = vector.load %arg15[%c2, %c0_24, %c1_25, %c0_26] : memref<4x9x9x16xf32, #tpu.memory_space<vmem>>, vector<1x8x8x16xf32>
    %25 = vector.shape_cast %24 : vector<1x8x8x16xf32> to vector<8x8x16xf32>
    %26 = vector.extract_strided_slice %17 {offsets = [1, 0, 0, 0], sizes = [1, 1, 1, 16], strides = [1, 1, 1, 1]} : vector<9x1x1x16xf32> to vector<1x1x1x16xf32>
    %27 = vector.shape_cast %26 : vector<1x1x1x16xf32> to vector<1x1x16xf32>
    %28 = vector.broadcast %27 : vector<1x1x16xf32> to vector<8x8x16xf32>
    %29 = arith.mulf %25, %28 : vector<8x8x16xf32>
    %30 = arith.addf %23, %29 : vector<8x8x16xf32>
    %c3_27 = arith.constant 3 : index
    %c0_28 = arith.constant 0 : index
    %c1_29 = arith.constant 1 : index
    %c0_30 = arith.constant 0 : index
    %31 = vector.load %arg15[%c3_27, %c0_28, %c1_29, %c0_30] : memref<4x9x9x16xf32, #tpu.memory_space<vmem>>, vector<1x8x8x16xf32>
    %32 = vector.shape_cast %31 : vector<1x8x8x16xf32> to vector<8x8x16xf32>
    %33 = vector.extract_strided_slice %17 {offsets = [2, 0, 0, 0], sizes = [1, 1, 1, 16], strides = [1, 1, 1, 1]} : vector<9x1x1x16xf32> to vector<1x1x1x16xf32>
    %34 = vector.shape_cast %33 : vector<1x1x1x16xf32> to vector<1x1x16xf32>
    %35 = vector.broadcast %34 : vector<1x1x16xf32> to vector<8x8x16xf32>
    %36 = arith.mulf %32, %35 : vector<8x8x16xf32>
    %37 = arith.addf %30, %36 : vector<8x8x16xf32>
    %c1_31 = arith.constant 1 : index
    %c1_32 = arith.constant 1 : index
    %c0_33 = arith.constant 0 : index
    %c0_34 = arith.constant 0 : index
    %38 = vector.load %arg15[%c1_31, %c1_32, %c0_33, %c0_34] : memref<4x9x9x16xf32, #tpu.memory_space<vmem>>, vector<1x8x8x16xf32>
    %39 = vector.shape_cast %38 : vector<1x8x8x16xf32> to vector<8x8x16xf32>
    %40 = vector.extract_strided_slice %17 {offsets = [3, 0, 0, 0], sizes = [1, 1, 1, 16], strides = [1, 1, 1, 1]} : vector<9x1x1x16xf32> to vector<1x1x1x16xf32>
    %41 = vector.shape_cast %40 : vector<1x1x1x16xf32> to vector<1x1x16xf32>
    %42 = vector.broadcast %41 : vector<1x1x16xf32> to vector<8x8x16xf32>
    %43 = arith.mulf %39, %42 : vector<8x8x16xf32>
    %44 = arith.addf %37, %43 : vector<8x8x16xf32>
    %c0_35 = arith.constant 0 : index
    %c1_36 = arith.constant 1 : index
    %c1_37 = arith.constant 1 : index
    %c0_38 = arith.constant 0 : index
    %45 = vector.load %arg15[%c0_35, %c1_36, %c1_37, %c0_38] : memref<4x9x9x16xf32, #tpu.memory_space<vmem>>, vector<1x8x8x16xf32>
    %46 = vector.shape_cast %45 : vector<1x8x8x16xf32> to vector<8x8x16xf32>
    %47 = vector.extract_strided_slice %17 {offsets = [4, 0, 0, 0], sizes = [1, 1, 1, 16], strides = [1, 1, 1, 1]} : vector<9x1x1x16xf32> to vector<1x1x1x16xf32>
    %48 = vector.shape_cast %47 : vector<1x1x1x16xf32> to vector<1x1x16xf32>
    %49 = vector.broadcast %48 : vector<1x1x16xf32> to vector<8x8x16xf32>
    %50 = arith.mulf %46, %49 : vector<8x8x16xf32>
    %51 = arith.addf %44, %50 : vector<8x8x16xf32>
    %c1_39 = arith.constant 1 : index
    %c1_40 = arith.constant 1 : index
    %c1_41 = arith.constant 1 : index
    %c0_42 = arith.constant 0 : index
    %52 = vector.load %arg15[%c1_39, %c1_40, %c1_41, %c0_42] : memref<4x9x9x16xf32, #tpu.memory_space<vmem>>, vector<1x8x8x16xf32>
    %53 = vector.shape_cast %52 : vector<1x8x8x16xf32> to vector<8x8x16xf32>
    %54 = vector.extract_strided_slice %17 {offsets = [5, 0, 0, 0], sizes = [1, 1, 1, 16], strides = [1, 1, 1, 1]} : vector<9x1x1x16xf32> to vector<1x1x1x16xf32>
    %55 = vector.shape_cast %54 : vector<1x1x1x16xf32> to vector<1x1x16xf32>
    %56 = vector.broadcast %55 : vector<1x1x16xf32> to vector<8x8x16xf32>
    %57 = arith.mulf %53, %56 : vector<8x8x16xf32>
    %58 = arith.addf %51, %57 : vector<8x8x16xf32>
    %c3_43 = arith.constant 3 : index
    %c1_44 = arith.constant 1 : index
    %c0_45 = arith.constant 0 : index
    %c0_46 = arith.constant 0 : index
    %59 = vector.load %arg15[%c3_43, %c1_44, %c0_45, %c0_46] : memref<4x9x9x16xf32, #tpu.memory_space<vmem>>, vector<1x8x8x16xf32>
    %60 = vector.shape_cast %59 : vector<1x8x8x16xf32> to vector<8x8x16xf32>
    %61 = vector.extract_strided_slice %17 {offsets = [6, 0, 0, 0], sizes = [1, 1, 1, 16], strides = [1, 1, 1, 1]} : vector<9x1x1x16xf32> to vector<1x1x1x16xf32>
    %62 = vector.shape_cast %61 : vector<1x1x1x16xf32> to vector<1x1x16xf32>
    %63 = vector.broadcast %62 : vector<1x1x16xf32> to vector<8x8x16xf32>
    %64 = arith.mulf %60, %63 : vector<8x8x16xf32>
    %65 = arith.addf %58, %64 : vector<8x8x16xf32>
    %c2_47 = arith.constant 2 : index
    %c1_48 = arith.constant 1 : index
    %c1_49 = arith.constant 1 : index
    %c0_50 = arith.constant 0 : index
    %66 = vector.load %arg15[%c2_47, %c1_48, %c1_49, %c0_50] : memref<4x9x9x16xf32, #tpu.memory_space<vmem>>, vector<1x8x8x16xf32>
    %67 = vector.shape_cast %66 : vector<1x8x8x16xf32> to vector<8x8x16xf32>
    %68 = vector.extract_strided_slice %17 {offsets = [7, 0, 0, 0], sizes = [1, 1, 1, 16], strides = [1, 1, 1, 1]} : vector<9x1x1x16xf32> to vector<1x1x1x16xf32>
    %69 = vector.shape_cast %68 : vector<1x1x1x16xf32> to vector<1x1x16xf32>
    %70 = vector.broadcast %69 : vector<1x1x16xf32> to vector<8x8x16xf32>
    %71 = arith.mulf %67, %70 : vector<8x8x16xf32>
    %72 = arith.addf %65, %71 : vector<8x8x16xf32>
    %c3_51 = arith.constant 3 : index
    %c1_52 = arith.constant 1 : index
    %c1_53 = arith.constant 1 : index
    %c0_54 = arith.constant 0 : index
    %73 = vector.load %arg15[%c3_51, %c1_52, %c1_53, %c0_54] : memref<4x9x9x16xf32, #tpu.memory_space<vmem>>, vector<1x8x8x16xf32>
    %74 = vector.shape_cast %73 : vector<1x8x8x16xf32> to vector<8x8x16xf32>
    %75 = vector.extract_strided_slice %17 {offsets = [8, 0, 0, 0], sizes = [1, 1, 1, 16], strides = [1, 1, 1, 1]} : vector<9x1x1x16xf32> to vector<1x1x1x16xf32>
    %76 = vector.shape_cast %75 : vector<1x1x1x16xf32> to vector<1x1x16xf32>
    %77 = vector.broadcast %76 : vector<1x1x16xf32> to vector<8x8x16xf32>
    %78 = arith.mulf %74, %77 : vector<8x8x16xf32>
    %79 = arith.addf %72, %78 : vector<8x8x16xf32>
    %c0_55 = arith.constant 0 : index
    %c0_56 = arith.constant 0 : index
    %c0_57 = arith.constant 0 : index
    %80 = vector.load %arg6[%c0_55, %c0_56, %c0_57] : memref<1x1x16xf32, #tpu.memory_space<vmem>>, vector<1x1x16xf32>
    %81 = vector.broadcast %80 : vector<1x1x16xf32> to vector<8x8x16xf32>
    %82 = arith.addf %79, %81 : vector<8x8x16xf32>
    %cst_58 = arith.constant 0.000000e+00 : f32
    %83 = vector.broadcast %cst_58 : f32 to vector<8x8x16xf32>
    %84 = arith.cmpf ogt, %82, %83 : vector<8x8x16xf32>
    %c0_59 = arith.constant 0 : index
    %c0_60 = arith.constant 0 : index
    %c0_61 = arith.constant 0 : index
    %85 = vector.load %arg7[%c0_59, %c0_60, %c0_61] : memref<1x1x16xf32, #tpu.memory_space<vmem>>, vector<1x1x16xf32>
    %86 = vector.broadcast %85 : vector<1x1x16xf32> to vector<8x8x16xf32>
    %87 = arith.mulf %86, %82 : vector<8x8x16xf32>
    %88 = arith.select %84, %82, %87 : vector<8x8x16xi1>, vector<8x8x16xf32>
    %89 = vector.shape_cast %88 : vector<8x8x16xf32> to vector<64x16xf32>
    %cst_62 = arith.constant dense<0.000000e+00> : vector<16xf32>
    %90 = vector.multi_reduction <add>, %89, %cst_62 [0] : vector<64x16xf32> to vector<16xf32>
    %91 = vector.shape_cast %90 : vector<16xf32> to vector<1x16xf32>
    %cst_63 = arith.constant 1.562500e-02 : f32
    %92 = vector.broadcast %cst_63 : f32 to vector<1x16xf32>
    %93 = arith.mulf %91, %92 : vector<1x16xf32>
    %c0_64 = arith.constant 0 : index
    %c0_65 = arith.constant 0 : index
    %94 = vector.load %arg8[%c0_64, %c0_65] : memref<16x8xf32, #tpu.memory_space<vmem>>, vector<16x8xf32>
    %cst_66 = arith.constant dense<0.000000e+00> : vector<1x8xf32>
    %95 = tpu.matmul %93, %94, %cst_66 {dimension_numbers = #tpu.dot_dimension_numbers<[1], [0], [0], [1], [0, 0, 1, 1], [], []>} : vector<1x16xf32>, vector<16x8xf32>, vector<1x8xf32> -> vector<1x8xf32>
    %c0_67 = arith.constant 0 : index
    %c0_68 = arith.constant 0 : index
    %96 = vector.load %arg9[%c0_67, %c0_68] : memref<1x8xf32, #tpu.memory_space<vmem>>, vector<1x8xf32>
    %97 = arith.addf %95, %96 : vector<1x8xf32>
    %cst_69 = arith.constant 0.000000e+00 : f32
    %98 = vector.broadcast %cst_69 : f32 to vector<1x8xf32>
    %99 = arith.maximumf %97, %98 : vector<1x8xf32>
    %c0_70 = arith.constant 0 : index
    %c0_71 = arith.constant 0 : index
    %100 = vector.load %arg10[%c0_70, %c0_71] : memref<8x16xf32, #tpu.memory_space<vmem>>, vector<8x16xf32>
    %cst_72 = arith.constant dense<0.000000e+00> : vector<1x16xf32>
    %101 = tpu.matmul %99, %100, %cst_72 {dimension_numbers = #tpu.dot_dimension_numbers<[1], [0], [0], [1], [0, 0, 1, 1], [], []>} : vector<1x8xf32>, vector<8x16xf32>, vector<1x16xf32> -> vector<1x16xf32>
    %c0_73 = arith.constant 0 : index
    %c0_74 = arith.constant 0 : index
    %102 = vector.load %arg11[%c0_73, %c0_74] : memref<1x16xf32, #tpu.memory_space<vmem>>, vector<1x16xf32>
    %103 = arith.addf %101, %102 : vector<1x16xf32>
    %cst_75 = arith.constant 3.000000e+00 : f32
    %104 = vector.broadcast %cst_75 : f32 to vector<1x16xf32>
    %105 = arith.addf %103, %104 : vector<1x16xf32>
    %cst_76 = arith.constant 0.000000e+00 : f32
    %cst_77 = arith.constant 6.000000e+00 : f32
    %106 = vector.broadcast %cst_76 : f32 to vector<1x16xf32>
    %107 = arith.maximumf %106, %105 : vector<1x16xf32>
    %108 = vector.broadcast %cst_77 : f32 to vector<1x16xf32>
    %109 = arith.minimumf %108, %107 : vector<1x16xf32>
    %cst_78 = arith.constant 0.166666672 : f32
    %110 = vector.broadcast %cst_78 : f32 to vector<1x16xf32>
    %111 = arith.mulf %109, %110 : vector<1x16xf32>
    %112 = vector.broadcast %111 : vector<1x16xf32> to vector<64x16xf32>
    %113 = arith.mulf %89, %112 : vector<64x16xf32>
    %c0_79 = arith.constant 0 : index
    %c0_80 = arith.constant 0 : index
    %114 = vector.load %arg12[%c0_79, %c0_80] : memref<8x16xf32, #tpu.memory_space<vmem>>, vector<8x16xf32>
    %cst_81 = arith.constant dense<0.000000e+00> : vector<8x64xf32>
    %115 = tpu.matmul %114, %113, %cst_81 {dimension_numbers = #tpu.dot_dimension_numbers<[1], [1], [0], [0], [0, 0, 1, 0], [], []>} : vector<8x16xf32>, vector<64x16xf32>, vector<8x64xf32> -> vector<8x64xf32>
    %c0_82 = arith.constant 0 : index
    %c0_83 = arith.constant 0 : index
    %116 = vector.load %arg13[%c0_82, %c0_83] : memref<8x1xf32, #tpu.memory_space<vmem>>, vector<8x1xf32>
    %117 = vector.broadcast %116 : vector<8x1xf32> to vector<8x64xf32>
    %118 = arith.addf %115, %117 : vector<8x64xf32>
    %c0_84 = arith.constant 0 : index
    %c0_85 = arith.constant 0 : index
    %c0_86 = arith.constant 0 : index
    %119 = vector.load %arg14[%c0_84, %c0_85, %c0_86] : memref<1x8x64xf32, #tpu.memory_space<vmem>>, vector<1x8x64xf32>
    %120 = vector.shape_cast %119 : vector<1x8x64xf32> to vector<8x64xf32>
    %121 = vector.shape_cast %118 : vector<8x64xf32> to vector<1x8x64xf32>
    tpu.vector_store %arg14[%c0_84, %c0_85, %c0_86], %121 {strides = array<i32>} : memref<1x8x64xf32, #tpu.memory_space<vmem>>, vector<1x8x64xf32>,
    return
  }
  func.func @transform_0(%arg0: i32) -> (i32, i32, i32) {
    %c0_i32 = arith.constant 0 : i32
    %c0_i32_0 = arith.constant 0 : i32
    %c0_i32_1 = arith.constant 0 : i32
    return %arg0, %c0_i32, %c0_i32_0 : i32, i32, i32
  }
  func.func @transform_1(%arg0: i32) -> (i32, i32) {
    %c0_i32 = arith.constant 0 : i32
    %c0_i32_0 = arith.constant 0 : i32
    %c0_i32_1 = arith.constant 0 : i32
    return %c0_i32, %c0_i32_0 : i32, i32
  }
  func.func @transform_2(%arg0: i32) -> (i32, i32) {
    %c0_i32 = arith.constant 0 : i32
    %c0_i32_0 = arith.constant 0 : i32
    %c0_i32_1 = arith.constant 0 : i32
    return %c0_i32, %c0_i32_0 : i32, i32
  }
  func.func @transform_3(%arg0: i32) -> (i32, i32) {
    %c0_i32 = arith.constant 0 : i32
    %c0_i32_0 = arith.constant 0 : i32
    %c0_i32_1 = arith.constant 0 : i32
    return %c0_i32, %c0_i32_0 : i32, i32
  }
  func.func @transform_4(%arg0: i32) -> (i32, i32, i32, i32) {
    %c0_i32 = arith.constant 0 : i32
    %c0_i32_0 = arith.constant 0 : i32
    %c0_i32_1 = arith.constant 0 : i32
    %c0_i32_2 = arith.constant 0 : i32
    %c0_i32_3 = arith.constant 0 : i32
    return %c0_i32, %c0_i32_0, %c0_i32_1, %c0_i32_2 : i32, i32, i32, i32
  }
  func.func @transform_5(%arg0: i32) -> (i32, i32, i32) {
    %c0_i32 = arith.constant 0 : i32
    %c0_i32_0 = arith.constant 0 : i32
    %c0_i32_1 = arith.constant 0 : i32
    %c0_i32_2 = arith.constant 0 : i32
    return %c0_i32, %c0_i32_0, %c0_i32_1 : i32, i32, i32
  }
  func.func @transform_6(%arg0: i32) -> (i32, i32, i32) {
    %c0_i32 = arith.constant 0 : i32
    %c0_i32_0 = arith.constant 0 : i32
    %c0_i32_1 = arith.constant 0 : i32
    %c0_i32_2 = arith.constant 0 : i32
    return %c0_i32, %c0_i32_0, %c0_i32_1 : i32, i32, i32
  }
  func.func @transform_7(%arg0: i32) -> (i32, i32) {
    %c0_i32 = arith.constant 0 : i32
    %c0_i32_0 = arith.constant 0 : i32
    %c0_i32_1 = arith.constant 0 : i32
    return %c0_i32, %c0_i32_0 : i32, i32
  }
  func.func @transform_8(%arg0: i32) -> (i32, i32) {
    %c0_i32 = arith.constant 0 : i32
    %c0_i32_0 = arith.constant 0 : i32
    %c0_i32_1 = arith.constant 0 : i32
    return %c0_i32, %c0_i32_0 : i32, i32
  }
  func.func @transform_9(%arg0: i32) -> (i32, i32) {
    %c0_i32 = arith.constant 0 : i32
    %c0_i32_0 = arith.constant 0 : i32
    %c0_i32_1 = arith.constant 0 : i32
    return %c0_i32, %c0_i32_0 : i32, i32
  }
  func.func @transform_10(%arg0: i32) -> (i32, i32) {
    %c0_i32 = arith.constant 0 : i32
    %c0_i32_0 = arith.constant 0 : i32
    %c0_i32_1 = arith.constant 0 : i32
    return %c0_i32, %c0_i32_0 : i32, i32
  }
  func.func @transform_11(%arg0: i32) -> (i32, i32) {
    %c0_i32 = arith.constant 0 : i32
    %c0_i32_0 = arith.constant 0 : i32
    %c0_i32_1 = arith.constant 0 : i32
    return %c0_i32, %c0_i32_0 : i32, i32
  }
  func.func @transform_12(%arg0: i32) -> (i32, i32) {
    %c0_i32 = arith.constant 0 : i32
    %c0_i32_0 = arith.constant 0 : i32
    %c0_i32_1 = arith.constant 0 : i32
    return %c0_i32, %c0_i32_0 : i32, i32
  }
  func.func @transform_13(%arg0: i32) -> (i32, i32, i32) {
    %c0_i32 = arith.constant 0 : i32
    %c0_i32_0 = arith.constant 0 : i32
    %c0_i32_1 = arith.constant 0 : i32
    return %arg0, %c0_i32, %c0_i32_0 : i32, i32, i32
  }
}

</mosaic_0001>

<bundles_post_ra>
// kernel: tpu_custom_call.1
= control target key start
LH: loop header
LB: loop body
LE: loop exit
PB: predicated region body
PF: predicated region fallthrough
CT: control target
= control target key end

     0   :  { %s2353_s0 = inlined_call_operand.vmem [shape: f32[2,256,4], index: 0, kind: input, shape index: {}]   ;;  %s2354_s1 = inlined_call_operand.vmem [shape: f32[4,16], index: 1, kind: input, shape index: {}]   ;;  %s2355_s2 = inlined_call_operand.vmem [shape: f32[1,16], index: 2, kind: input, shape index: {}]   ;;  %s2356_s3 = inlined_call_operand.vmem [shape: f32[1,16], index: 3, kind: input, shape index: {}]   ;;  %s2357_s4 = inlined_call_operand.vmem [shape: f32[9,1,1,16], index: 4, kind: input, shape index: {}]   ;;  %s2358_s5 = inlined_call_operand.vmem [shape: f32[1,1,16], index: 5, kind: input, shape index: {}]   ;;  %s2359_s6 = inlined_call_operand.vmem [shape: f32[1,1,16], index: 6, kind: input, shape index: {}]   ;;  %s2360_s7 = inlined_call_operand.vmem [shape: f32[16,8], index: 7, kind: input, shape index: {}]   ;;  %s2361_s8 = inlined_call_operand.vmem [shape: f32[1,8], index: 8, kind: input, shape index: {}]   ;;  %s2362_s9 = inlined_call_operand.vmem [shape: f32[8,16], index: 9, kind: input, shape index: {}]   ;;  %s2363_s10 = inlined_call_operand.vmem [shape: f32[1,16], index: 10, kind: input, shape index: {}]   ;;  %s2364_s11 = inlined_call_operand.vmem [shape: f32[8,16], index: 11, kind: input, shape index: {}]   ;;  %s2365_s12 = inlined_call_operand.vmem [shape: f32[8,1], index: 12, kind: input, shape index: {}]   ;;  %s2366_s13 = inlined_call_operand.hbm [shape: f32[2,8,64], index: 13, kind: output, shape index: {}]  }
   0x1   :  { %2368 = sst [smem:[#allocation7_spill]] %s2353_s0 }
   0x2   :  { %2369 = sst [smem:[#allocation8_spill]] %s2354_s1 }
   0x3   :  { %2370 = sst [smem:[#allocation9_spill]] %s2355_s2 }
   0x4   :  { %2371 = sst [smem:[#allocation10_spill]] %s2356_s3 }
   0x5   :  { %18 = vsyncpa [#allocation4], 0 }
   0x6   :  { %20 = vsyncpa [#allocation4 + $0x1], 0  ;;  %s1655_s25 = smov 0   ;;  %s1657_s26 = smov 0  }
   0x7   :  { %s1659_s27 = smov 0   ;;  %s1661_s28 = smov 0  }
   0x8 LB: > { %s1676_s29 = sadd.s32 4294967295, %s1581_s28   ;;  %s1405_s30 = sadd.s32 4294967294, %s1581_s28   ;;  %s1581_s28 = sphi %s1661_s28, %s2383_s28   ;;  %s1577_s27 = sphi %s1659_s27, %s2382_s27   ;;  %s1573_s26 = sphi %s1657_s26, %s2381_s26   ;;  %s1569_s25 = sphi %s1655_s25, %s2380_s25  }
   0x9   : > { %s1680_s14 = sadd.s32 1, %s1581_s28   ;;  %s311_s15 = sadd.s32 1, %s1577_s27 }
   0xa   : > { %s308_s16 = ssub.s32 %s1581_s28, %s1680_s14  ;;  %p321_p0 = scmp.ne.s32.totalorder %s1577_s27, %s1573_s26 }
   0xb   : > { %p309_p1 = scmp.eq.s32.totalorder %s308_s16, 0  ;;  %p322_p2 = scmp.eq.s32.totalorder %s1676_s29, 1 }
   0xc   : > { %p327_p3 = scmp.ne.s32.totalorder %s1573_s26, %s1569_s25  ;;  %p328_p4 = scmp.eq.s32.totalorder %s1405_s30, 1 }
   0xd   : > { %s1691_s17 = scalar_select %p309_p1, %s1577_s27, %s311_s15  }
   0xe   : > { %p1693_p5 = por %p322_p2, %p321_p0  ;;  %p1697_p6 = por %p328_p4, %p327_p3 }
   0xf   : > { %p1408_p7 = scmp.ge.s32.totalorder %s1581_s28, 1  ;;  %p390_p8 = scmp.lt.s32.totalorder %s1581_s28, 3 }
  0x11   : > { %p391_p9 = pnand %p1408_p7, %p390_p8 }
  0x13   : > { %394 = sbr.rel (%p391_p9) target bundleno = 736 (0x2e0), region = 72 }
  0x18   : > { %s2374_s1 = sld [smem:[#allocation8_spill]]  ;;  %vm573_vm0 = vcmask 1043456   ;;  %p434_p10 = scmp.lt.s32.totalorder %s1676_s29, 1  ;;  %vm476_vm1 = vcmask 31744   ;;  %vm790_vm2 = vcmask 130048   ;;  %vm792_vm3 = vcmask 122880  }
  0x19   : > { %s2375_s0 = sld [smem:[#allocation7_spill]]  ;;  %v1583_v33 = vmov 0.0   ;;  %s431_s16 = sand.u32 1, %s1573_s26  }
  0x1a   : > { %s435_s22 = scalar_select %p434_p10, %s1676_s29, 1  ;;  %794 = vst.msk [vmem:[#allocation2 + $0x10] sm:$0xff] %vm790_vm2, %v1583_v33 }
  0x1b   : > { %795 = vst.msk [vmem:[#allocation2 + $0x18] sm:$0x1] %vm792_vm3, %v1583_v33  ;;  %s2376_s2 = sld [smem:[#allocation9_spill]]  ;;  %s1409_s20 = sshll.u32 %s431_s16, 3 }
  0x1c   : > { %s1460_s23 = sshll.u32 %s435_s22, 8  ;;  %796 = vst.msk [vmem:[#allocation2 + $0x20] sm:$0xff] %vm790_vm2, %v1583_v33  ;;  %s2377_s3 = sld [smem:[#allocation10_spill]] }
  0x1d   : > { %797 = vst.msk [vmem:[#allocation2 + $0x28] sm:$0x1] %vm792_vm3, %v1583_v33  ;;  %s1457_s21 = sshll.u32 %s1676_s29, 3  ;;  %s1331_s30 = scalar_lea.sflag [#allocation4], %s431_s16 }
  0x1e   : > { %v471_v0 = vld [vmem:[%s2374_s1] sm:$0xf]  ;;  %798 = vst.msk [vmem:[#allocation2 + $0x30] sm:$0xff] %vm790_vm2, %v1583_v33  ;;  %s1341_s24 = scalar_lea.hbm %s2366_s13, %s1457_s21 }
  0x1f   : > { %1412 = vmatpush.msk.msra.mxu0 %vm573_vm0, %v471_v0  ;;  %1462 = vmatpush.msk.msra.mxu2 %vm573_vm0, %v471_v0  ;;  %s1711_s15 = scalar_lea.vmem %s2375_s0, %s1460_s23  ;;  %799 = vst.msk [vmem:[#allocation2 + $0x38] sm:$0x1] %vm792_vm3, %v1583_v33  ;;  %s433_s0 = scalar_lea.vmem [#allocation3], %s1409_s20 }
  0x20   : > { %1461 = vmatpush.msk.msra.mxu1 %vm573_vm0, %v471_v0  ;;  %1463 = vmatpush.msk.msra.mxu3 %vm573_vm0, %v471_v0  ;;  %v439_v1 = vld [vmem:[%s1711_s15] sm:$0xff]  ;;  %v457_v2 = vld [vmem:[%s1711_s15 + $0x90] sm:$0xff]  ;;  %v466_v4 = vld [vmem:[%s1711_s15 + $0xd8] sm:$0xff]  ;;  %800 = vst.msk [vmem:[#allocation2 + $0x40] sm:$0xff] %vm790_vm2, %v1583_v33  ;;  %s1343_s1 = sshll.u32 %s433_s0, 4  ;;  %s1539_s20 = scalar_lea.hbm %s2366_s13, 16  ;;  %s1344_s1 = int_to_ptr.vmem [resolvable:$true] %s1343_s1 }
  0x21   : > { %v449_v3 = vld [vmem:[%s1711_s15 + $0x50] sm:$0xff]  ;;  %1413 = vmatmul.msk.f32.vlgmr.msra.gmra.mxu0 %vm476_vm1, %v439_v1  ;;  %1431 = vmatmul.msk.f32.vlgmr.msra.gmra.mxu2 %vm476_vm1, %v457_v2  ;;  %v440_v5 = vld [vmem:[%s1711_s15 + $0x8] sm:$0xff]  ;;  %v458_v6 = vld [vmem:[%s1711_s15 + $0x98] sm:$0xff]  ;;  %801 = vst.msk [vmem:[#allocation2 + $0x48] sm:$0x1] %vm792_vm3, %v1583_v33 }
  0x22   : > { %1423 = vmatmul.msk.f32.vlgmr.msra.gmra.mxu1 %vm476_vm1, %v449_v3  ;;  %1440 = vmatmul.msk.f32.vlgmr.msra.gmra.mxu3 %vm476_vm1, %v466_v4  ;;  %v450_v7 = vld [vmem:[%s1711_s15 + $0x58] sm:$0xff]  ;;  %v467_v8 = vld [vmem:[%s1711_s15 + $0xe0] sm:$0xff]  ;;  %v441_v9 = vld [vmem:[%s1711_s15 + $0x10] sm:$0xff]  ;;  %802 = vst.msk [vmem:[#allocation2 + $0x50] sm:$0xff] %vm790_vm2, %v1583_v33 }
  0x23   : > { %v459_v10 = vld [vmem:[%s1711_s15 + $0xa0] sm:$0xff]  ;;  %v468_v12 = vld [vmem:[%s1711_s15 + $0xe8] sm:$0xff]  ;;  %v442_v13 = vld [vmem:[%s1711_s15 + $0x18] sm:$0xff]  ;;  %803 = vst.msk [vmem:[#allocation2 + $0x58] sm:$0x1] %vm792_vm3, %v1583_v33 }
  0x24   : > { %v451_v11 = vld [vmem:[%s1711_s15 + $0x60] sm:$0xff]  ;;  %v460_v14 = vld [vmem:[%s1711_s15 + $0xa8] sm:$0xff]  ;;  %v469_v16 = vld [vmem:[%s1711_s15 + $0xf0] sm:$0xff]  ;;  %804 = vst.msk [vmem:[#allocation2 + $0x60] sm:$0xff] %vm790_vm2, %v1583_v33 }
  0x25   : > { %v452_v15 = vld [vmem:[%s1711_s15 + $0x68] sm:$0xff]  ;;  %v443_v17 = vld [vmem:[%s1711_s15 + $0x20] sm:$0xff]  ;;  %v461_v18 = vld [vmem:[%s1711_s15 + $0xb0] sm:$0xff]  ;;  %805 = vst.msk [vmem:[#allocation2 + $0x68] sm:$0x1] %vm792_vm3, %v1583_v33 }
  0x26   : > { %v453_v19 = vld [vmem:[%s1711_s15 + $0x70] sm:$0xff]  ;;  %v470_v20 = vld [vmem:[%s1711_s15 + $0xf8] sm:$0xff]  ;;  %v444_v21 = vld [vmem:[%s1711_s15 + $0x28] sm:$0xff]  ;;  %806 = vst.msk [vmem:[#allocation2 + $0x70] sm:$0xff] %vm790_vm2, %v1583_v33 }
  0x27   : > { %v462_v22 = vld [vmem:[%s1711_s15 + $0xb8] sm:$0xff]  ;;  %v445_v24 = vld [vmem:[%s1711_s15 + $0x30] sm:$0xff]  ;;  %v463_v25 = vld [vmem:[%s1711_s15 + $0xc0] sm:$0xff]  ;;  %807 = vst.msk [vmem:[#allocation2 + $0x78] sm:$0x1] %vm792_vm3, %v1583_v33 }
  0x28   : > { %v454_v23 = vld [vmem:[%s1711_s15 + $0x78] sm:$0xff]  ;;  %v455_v26 = vld [vmem:[%s1711_s15 + $0x80] sm:$0xff]  ;;  %v464_v28 = vld [vmem:[%s1711_s15 + $0xc8] sm:$0xff]  ;;  %808 = vst.msk [vmem:[#allocation2 + $0x80] sm:$0xff] %vm790_vm2, %v1583_v33 }
  0x29   : > { %1414 = vmatmul.msk.f32.gmra.mxu0 %vm476_vm1, %v440_v5  ;;  %1432 = vmatmul.msk.f32.gmra.mxu2 %vm476_vm1, %v458_v6  ;;  %v446_v27 = vld [vmem:[%s1711_s15 + $0x38] sm:$0xff]  ;;  %v456_v29 = vld [vmem:[%s1711_s15 + $0x88] sm:$0xff]  ;;  %v447_v30 = vld [vmem:[%s1711_s15 + $0x40] sm:$0xff]  ;;  %809 = vst.msk [vmem:[#allocation2 + $0x88] sm:$0x1] %vm792_vm3, %v1583_v33 }
  0x2a   : > { %1424 = vmatmul.msk.f32.gmra.mxu1 %vm476_vm1, %v450_v7  ;;  %1441 = vmatmul.msk.f32.gmra.mxu3 %vm476_vm1, %v467_v8  ;;  %v465_v31 = vld [vmem:[%s1711_s15 + $0xd0] sm:$0xff]  ;;  %v448_v32 = vld [vmem:[%s1711_s15 + $0x48] sm:$0xff]  ;;  %812 = vst.msk [vmem:[#allocation2 + $0xa0] sm:$0xff] %vm790_vm2, %v1583_v33  ;;  %v1820_v34 = vld [vmem:[%s2376_s2] ss:$0 sm:$0xff]  ;;  %s1345_s2 = sshll.u32 %s1341_s24, 4  ;;  %s1346_s2 = int_to_ptr.hbm [resolvable:$true] %s1345_s2 }
  0x2b   : > { %813 = vst.msk [vmem:[#allocation2 + $0xa8] sm:$0x1] %vm792_vm3, %v1583_v33  ;;  %v1829_v35 = vld [vmem:[%s2377_s3] ss:$0 sm:$0xff]  ;;  %v1929_v5 = vld [vmem:[%s2357_s4 + $0x4] ss:$0 sm:$0xff] }
  0x2c   : > { %814 = vst.msk [vmem:[#allocation2 + $0xb0] sm:$0xff] %vm790_vm2, %v1583_v33  ;;  %s1533_s15 = sshra.s32 %s1346_s2, 4  ;;  %s1534_s15 = int_to_ptr.hbm [resolvable:$true] %s1533_s15 }
  0x2d   : > { %815 = vst.msk [vmem:[#allocation2 + $0xb8] sm:$0x1] %vm792_vm3, %v1583_v33  ;;  %s1535_s3 = scalar_lea.hbm %s1534_s15, 8  ;;  %p1540_p0 = scmp.lt.s32.totalorder %s1534_s15, %s2366_s13 }
  0x2e   : > { %816 = vst.msk [vmem:[#allocation2 + $0xc0] sm:$0xff] %vm790_vm2, %v1583_v33  ;;  %p1536_p11 = scmp.ne.s32.totalorder %s1534_s15, %s1535_s3  ;;  %p1541_p1 = scmp.lt.s32.totalorder %s1539_s20, %s1535_s3 }
  0x2f   : > { %817 = vst.msk [vmem:[#allocation2 + $0xc8] sm:$0x1] %vm792_vm3, %v1583_v33 }
  0x30   : > { %818 = vst.msk [vmem:[#allocation2 + $0xd0] sm:$0xff] %vm790_vm2, %v1583_v33  ;;  %p1537_p12 = pnand %p1536_p11, %p1693_p5  ;;  %p1542_p2 = por %p1541_p1, %p1540_p0 }
  0x31   : > { %1415 = vmatmul.msk.f32.gmra.mxu0 %vm476_vm1, %v441_v9  ;;  %1433 = vmatmul.msk.f32.gmra.mxu2 %vm476_vm1, %v459_v10  ;;  %819 = vst.msk [vmem:[#allocation2 + $0xd8] sm:$0x1] %vm792_vm3, %v1583_v33 }
  0x32   : > { %1425 = vmatmul.msk.f32.gmra.mxu1 %vm476_vm1, %v451_v11  ;;  %1442 = vmatmul.msk.f32.gmra.mxu3 %vm476_vm1, %v468_v12  ;;  %820 = vst.msk [vmem:[#allocation2 + $0xe0] sm:$0xff] %vm790_vm2, %v1583_v33  ;;  %p1538_p13 = pneg %p1537_p12 }
  0x33   : > { %821 = vst.msk [vmem:[#allocation2 + $0xe8] sm:$0x1] %vm792_vm3, %v1583_v33 }
  0x34   : > { %822 = vst.msk [vmem:[#allocation2 + $0xf0] sm:$0xff] %vm790_vm2, %v1583_v33  ;;  %p1543_p3 = pnand %p1542_p2, %p1538_p13 }
  0x35   : > { %823 = vst.msk [vmem:[#allocation2 + $0xf8] sm:$0x1] %vm792_vm3, %v1583_v33 }
  0x36   : > { %824 = vst.msk [vmem:[#allocation2 + $0x100] sm:$0xff] %vm790_vm2, %v1583_v33 }
  0x37   : > { %825 = vst.msk [vmem:[#allocation2 + $0x108] sm:$0x1] %vm792_vm3, %v1583_v33 }
  0x38   : > { %826 = vst.msk [vmem:[#allocation2 + $0x110] sm:$0xff] %vm790_vm2, %v1583_v33 }
  0x39   : > { %1416 = vmatmul.msk.f32.gmra.mxu0 %vm476_vm1, %v442_v13  ;;  %1434 = vmatmul.msk.f32.gmra.mxu2 %vm476_vm1, %v460_v14  ;;  %827 = vst.msk [vmem:[#allocation2 + $0x118] sm:$0x1] %vm792_vm3, %v1583_v33 }
  0x3a   : > { %1426 = vmatmul.msk.f32.gmra.mxu1 %vm476_vm1, %v452_v15  ;;  %1443 = vmatmul.msk.f32.gmra.mxu3 %vm476_vm1, %v469_v16  ;;  %828 = vst.msk [vmem:[#allocation2 + $0x120] sm:$0xff] %vm790_vm2, %v1583_v33 }
  0x3b   : > { %829 = vst.msk [vmem:[#allocation2 + $0x128] sm:$0x1] %vm792_vm3, %v1583_v33 }
  0x3c   : > { %830 = vst.msk [vmem:[#allocation2 + $0x130] sm:$0xff] %vm790_vm2, %v1583_v33 }
  0x3d   : > { %831 = vst.msk [vmem:[#allocation2 + $0x138] sm:$0x1] %vm792_vm3, %v1583_v33 }
  0x3e   : > { %832 = vst.msk [vmem:[#allocation2 + $0x140] sm:$0xff] %vm790_vm2, %v1583_v33 }
  0x3f   : > { %833 = vst.msk [vmem:[#allocation2 + $0x148] sm:$0x1] %vm792_vm3, %v1583_v33 }
  0x40   : > { %834 = vst.msk [vmem:[#allocation2 + $0x150] sm:$0xff] %vm790_vm2, %v1583_v33 }
  0x41   : > { %1417 = vmatmul.msk.f32.gmra.mxu0 %vm476_vm1, %v443_v17  ;;  %1435 = vmatmul.msk.f32.gmra.mxu2 %vm476_vm1, %v461_v18  ;;  %835 = vst.msk [vmem:[#allocation2 + $0x158] sm:$0x1] %vm792_vm3, %v1583_v33 }
  0x42   : > { %1427 = vmatmul.msk.f32.gmra.mxu1 %vm476_vm1, %v453_v19  ;;  %1444 = vmatmul.msk.f32.gmra.mxu3 %vm476_vm1, %v470_v20  ;;  %836 = vst.msk [vmem:[#allocation2 + $0x160] sm:$0xff] %vm790_vm2, %v1583_v33 }
  0x43   : > { %837 = vst.msk [vmem:[#allocation2 + $0x168] sm:$0x1] %vm792_vm3, %v1583_v33 }
  0x44   : > { %838 = vst.msk [vmem:[#allocation2 + $0x170] sm:$0xff] %vm790_vm2, %v1583_v33 }
  0x45   : > { %839 = vst.msk [vmem:[#allocation2 + $0x178] sm:$0x1] %vm792_vm3, %v1583_v33 }
  0x46   : > { %840 = vst.msk [vmem:[#allocation2 + $0x180] sm:$0xff] %vm790_vm2, %v1583_v33 }
  0x47   : > { %841 = vst.msk [vmem:[#allocation2 + $0x188] sm:$0x1] %vm792_vm3, %v1583_v33 }
  0x48   : > { %842 = vst.msk [vmem:[#allocation2 + $0x190] sm:$0xff] %vm790_vm2, %v1583_v33 }
  0x49   : > { %1418 = vmatmul.msk.f32.gmra.mxu0 %vm476_vm1, %v444_v21  ;;  %1436 = vmatmul.msk.f32.gmra.mxu2 %vm476_vm1, %v462_v22  ;;  %843 = vst.msk [vmem:[#allocation2 + $0x198] sm:$0x1] %vm792_vm3, %v1583_v33 }
  0x4a   : > { %1428 = vmatmul.msk.f32.gmra.mxu1 %vm476_vm1, %v454_v23  ;;  %844 = vst.msk [vmem:[#allocation2 + $0x1a0] sm:$0xff] %vm790_vm2, %v1583_v33 }
  0x4b   : > { %845 = vst.msk [vmem:[#allocation2 + $0x1a8] sm:$0x1] %vm792_vm3, %v1583_v33 }
  0x4c   : > { %846 = vst.msk [vmem:[#allocation2 + $0x1b0] sm:$0xff] %vm790_vm2, %v1583_v33 }
  0x4d   : > { %847 = vst.msk [vmem:[#allocation2 + $0x1b8] sm:$0x1] %vm792_vm3, %v1583_v33 }
  0x4e   : > { %848 = vst.msk [vmem:[#allocation2 + $0x1c0] sm:$0xff] %vm790_vm2, %v1583_v33 }
  0x4f   : > { %849 = vst.msk [vmem:[#allocation2 + $0x1c8] sm:$0x1] %vm792_vm3, %v1583_v33 }
  0x50   : > { %850 = vst.msk [vmem:[#allocation2 + $0x1d0] sm:$0xff] %vm790_vm2, %v1583_v33 }
  0x51   : > { %1419 = vmatmul.msk.f32.gmra.mxu0 %vm476_vm1, %v445_v24  ;;  %1437 = vmatmul.msk.f32.gmra.mxu2 %vm476_vm1, %v463_v25  ;;  %851 = vst.msk [vmem:[#allocation2 + $0x1d8] sm:$0x1] %vm792_vm3, %v1583_v33 }
  0x52   : > { %1429 = vmatmul.msk.f32.gmra.mxu1 %vm476_vm1, %v455_v26  ;;  %852 = vst.msk [vmem:[#allocation2 + $0x1e0] sm:$0xff] %vm790_vm2, %v1583_v33 }
  0x53   : > { %853 = vst.msk [vmem:[#allocation2 + $0x1e8] sm:$0x1] %vm792_vm3, %v1583_v33 }
  0x54   : > { %854 = vst.msk [vmem:[#allocation2 + $0x1f0] sm:$0xff] %vm790_vm2, %v1583_v33 }
  0x55   : > { %855 = vst.msk [vmem:[#allocation2 + $0x1f8] sm:$0x1] %vm792_vm3, %v1583_v33 }
  0x56   : > { %856 = vst.msk [vmem:[#allocation2 + $0x200] sm:$0xff] %vm790_vm2, %v1583_v33 }
  0x57   : > { %857 = vst.msk [vmem:[#allocation2 + $0x208] sm:$0x1] %vm792_vm3, %v1583_v33 }
  0x58   : > { %858 = vst.msk [vmem:[#allocation2 + $0x210] sm:$0xff] %vm790_vm2, %v1583_v33 }
  0x59   : > { %1420 = vmatmul.msk.f32.gmra.mxu0 %vm476_vm1, %v446_v27  ;;  %1438 = vmatmul.msk.f32.gmra.mxu2 %vm476_vm1, %v464_v28  ;;  %859 = vst.msk [vmem:[#allocation2 + $0x218] sm:$0x1] %vm792_vm3, %v1583_v33 }
  0x5a   : > { %1430 = vmatmul.msk.f32.gmra.mxu1 %vm476_vm1, %v456_v29  ;;  %860 = vst.msk [vmem:[#allocation2 + $0x220] sm:$0xff] %vm790_vm2, %v1583_v33 }
  0x5b   : > { %861 = vst.msk [vmem:[#allocation2 + $0x228] sm:$0x1] %vm792_vm3, %v1583_v33 }
  0x5c   : > { %862 = vst.msk [vmem:[#allocation2 + $0x230] sm:$0xff] %vm790_vm2, %v1583_v33 }
  0x5d   : > { %863 = vst.msk [vmem:[#allocation2 + $0x238] sm:$0x1] %vm792_vm3, %v1583_v33 }
  0x61   : > { %1421 = vmatmul.msk.f32.gmra.mxu0 %vm476_vm1, %v447_v30  ;;  %1439 = vmatmul.msk.f32.gmra.mxu2 %vm476_vm1, %v465_v31 }
  0x69   : > { %1422 = vmatmul.msk.f32.gmra.mxu0 %vm476_vm1, %v448_v32 }
  0x9e   : > { %v594_v36 = vpop.f32.mrf.mxu0 }
  0x9f   : > { %v595_v37 = vadd.f32 %v1820_v34, %v594_v36  ;;  %v624_v39 = vpop.f32.mrf.mxu1 }
  0xa0   : > { %v625_v52 = vadd.f32 %v1820_v34, %v624_v39 }
  0xa1   : > { %vm690_vm4 = vcmp.gt.f32.partialorder %v595_v37, 0.0  ;;  %v726_v38 = vmul.f32 %v1829_v35, %v595_v37 }
  0xa2   : > { %v736_v56 = vmul.f32 %v1829_v35, %v625_v52  ;;  %vm700_vm5 = vcmp.gt.f32.partialorder %v625_v52, 0.0 }
  0xa3   : > { %v758_v40 = vsel %vm690_vm4, %v595_v37, %v726_v38 }
  0xa4   : > { %865 = vst.msk [vmem:[#allocation2 + $0x11] sm:$0xff] %vm790_vm2, %v758_v40  ;;  %v648_v41 = vpop.f32.mrf.mxu2  ;;  %v768_v2 = vsel %vm700_vm5, %v625_v52, %v736_v56 }
  0xa5   : > { %v675_v45 = vpop.f32.mrf.mxu3  ;;  %v649_v53 = vadd.f32 %v1820_v34, %v648_v41  ;;  %875 = vst.msk [vmem:[#allocation2 + $0xc1] sm:$0xff] %vm790_vm2, %v768_v2 }
  0xa6   : > { %v597_v42 = vpop.f32.mrf.mxu0  ;;  %v676_v61 = vadd.f32 %v1820_v34, %v675_v45 }
  0xa7   : > { %v627_v43 = vpop.f32.mrf.mxu1  ;;  %v744_v58 = vmul.f32 %v1829_v35, %v649_v53  ;;  %v598_v59 = vadd.f32 %v1820_v34, %v597_v42  ;;  %vm708_vm6 = vcmp.gt.f32.partialorder %v649_v53, 0.0 }
  0xa8   : > { %v628_v0 = vadd.f32 %v1820_v34, %v627_v43  ;;  %vm717_vm9 = vcmp.gt.f32.partialorder %v676_v61, 0.0  ;;  %v753_v9 = vmul.f32 %v1829_v35, %v676_v61 }
  0xa9   : > { %v776_v6 = vsel %vm708_vm6, %v649_v53, %v744_v58  ;;  %vm691_vm7 = vcmp.gt.f32.partialorder %v598_v59, 0.0  ;;  %v727_v7 = vmul.f32 %v1829_v35, %v598_v59 }
  0xaa   : > { %v737_v13 = vmul.f32 %v1829_v35, %v628_v0  ;;  %vm701_vm12 = vcmp.gt.f32.partialorder %v628_v0, 0.0  ;;  %v785_v28 = vsel %vm717_vm9, %v676_v61, %v753_v9  ;;  %883 = vst.msk [vmem:[#allocation2 + $0x151] sm:$0xff] %vm790_vm2, %v776_v6  ;;  %v2000_v61 = vld [vmem:[%s2357_s4 + $0x3] ss:$0 sm:$0xff]  ;;  %v2018_v6 = vld [vmem:[%s2357_s4] ss:$0 sm:$0xff] }
  0xab   : > { %v1009_v12 = vld [vmem:[#allocation2 + $0x11] sm:$0xff]  ;;  %v759_v23 = vsel %vm691_vm7, %v598_v59, %v727_v7  ;;  %892 = vst.msk [vmem:[#allocation2 + $0x1f1] sm:$0xff] %vm790_vm2, %v785_v28 }
  0xac   : > { %v651_v44 = vpop.f32.mrf.mxu2  ;;  %v1953_v22 = vmul.f32 %v1929_v5, %v1009_v12  ;;  %v769_v26 = vsel %vm701_vm12, %v628_v0, %v737_v13  ;;  %866 = vst.msk [vmem:[#allocation2 + $0x21] sm:$0xff] %vm790_vm2, %v759_v23  ;;  %v984_v2 = vld [vmem:[#allocation2 + $0xc0] sm:$0xff] }
  0xad   : > { %v678_v49 = vpop.f32.mrf.mxu3  ;;  %v652_v60 = vadd.f32 %v1820_v34, %v651_v44  ;;  %876 = vst.msk [vmem:[#allocation2 + $0xd1] sm:$0xff] %vm790_vm2, %v769_v26 }
  0xae   : > { %v600_v46 = vpop.f32.mrf.mxu0  ;;  %v679_v4 = vadd.f32 %v1820_v34, %v678_v49 }
  0xaf   : > { %v630_v47 = vpop.f32.mrf.mxu1  ;;  %v601_v62 = vadd.f32 %v1820_v34, %v600_v46  ;;  %v745_v8 = vmul.f32 %v1829_v35, %v652_v60  ;;  %vm709_vm8 = vcmp.gt.f32.partialorder %v652_v60, 0.0 }
  0xb0   : > { %v631_v1 = vadd.f32 %v1820_v34, %v630_v47  ;;  %v754_v17 = vmul.f32 %v1829_v35, %v679_v4  ;;  %vm718_vm14 = vcmp.gt.f32.partialorder %v679_v4, 0.0 }
  0xb1   : > { %vm692_vm10 = vcmp.gt.f32.partialorder %v601_v62, 0.0  ;;  %v728_v14 = vmul.f32 %v1829_v35, %v601_v62  ;;  %v777_v27 = vsel %vm709_vm8, %v652_v60, %v745_v8 }
  0xb2   : > { %vm702_vm11 = vcmp.gt.f32.partialorder %v631_v1, 0.0  ;;  %v738_v15 = vmul.f32 %v1829_v35, %v631_v1  ;;  %v786_v33 = vsel %vm718_vm14, %v679_v4, %v754_v17  ;;  %884 = vst.msk [vmem:[#allocation2 + $0x161] sm:$0xff] %vm790_vm2, %v777_v27  ;;  %v2013_v4 = vld [vmem:[#allocation2 + $0x151] sm:$0xff]  ;;  %v2029_v17 = vmul.f32 %v2000_v61, %v984_v2 }
  0xb3   : > { %v760_v30 = vsel %vm692_vm10, %v601_v62, %v728_v14  ;;  %v2005_v62 = vld [vmem:[%s2357_s4 + $0x1] ss:$0 sm:$0xff]  ;;  %893 = vst.msk [vmem:[#allocation2 + $0x201] sm:$0xff] %vm790_vm2, %v786_v33  ;;  %v2047_v27 = vld [vmem:[#allocation2 + $0x1f0] sm:$0xff] }
  0xb4   : > { %v654_v48 = vpop.f32.mrf.mxu2  ;;  %v770_v31 = vsel %vm702_vm11, %v631_v1, %v738_v15  ;;  %867 = vst.msk [vmem:[#allocation2 + $0x31] sm:$0xff] %vm790_vm2, %v760_v30  ;;  %v907_v15 = vld [vmem:[#allocation2 + $0x1b0] sm:$0xff]  ;;  %v2045_v26 = vmul.f32 %v2005_v62, %v2013_v4  ;;  %v2057_v30 = vld [vmem:[%s2357_s4 + $0x5] ss:$0 sm:$0xff] }
  0xb5   : > { %v681_v55 = vpop.f32.mrf.mxu3  ;;  %v655_v3 = vadd.f32 %v1820_v34, %v654_v48  ;;  %877 = vst.msk [vmem:[#allocation2 + $0xe1] sm:$0xff] %vm790_vm2, %v770_v31  ;;  %v1038_v31 = vld [vmem:[#allocation2 + $0xc1] sm:$0xff]  ;;  %v985_v33 = vld [vmem:[#allocation2 + $0xd0] sm:$0xff] }
  0xb6   : > { %v603_v50 = vpop.f32.mrf.mxu0  ;;  %v682_v24 = vadd.f32 %v1820_v34, %v681_v55 }
  0xb7   : > { %v633_v51 = vpop.f32.mrf.mxu1  ;;  %vm710_vm13 = vcmp.gt.f32.partialorder %v655_v3, 0.0  ;;  %v746_v16 = vmul.f32 %v1829_v35, %v655_v3  ;;  %v604_v19 = vadd.f32 %v1820_v34, %v603_v50 }
  0xb8   : > { %v634_v20 = vadd.f32 %v1820_v34, %v633_v51  ;;  %v755_v39 = vmul.f32 %v1829_v35, %v682_v24  ;;  %vm719_vm3 = vcmp.gt.f32.partialorder %v682_v24, 0.0 }
  0xb9   : > { %v778_v32 = vsel %vm710_vm13, %v655_v3, %v746_v16  ;;  %vm693_vm15 = vcmp.gt.f32.partialorder %v604_v19, 0.0  ;;  %v729_v36 = vmul.f32 %v1829_v35, %v604_v19  ;;  %v927_v16 = vld [vmem:[#allocation2 + $0x121] sm:$0xff] }
  0xba   : > { %v739_v37 = vmul.f32 %v1829_v35, %v634_v20  ;;  %vm703_vm0 = vcmp.gt.f32.partialorder %v634_v20, 0.0  ;;  %885 = vst.msk [vmem:[#allocation2 + $0x171] sm:$0xff] %vm790_vm2, %v778_v32 }
  0xbb   : > { %v761_v50 = vsel %vm693_vm15, %v604_v19, %v729_v36 }
  0xbc   : > { %v657_v54 = vpop.f32.mrf.mxu2  ;;  %v771_v51 = vsel %vm703_vm0, %v634_v20, %v739_v37  ;;  %868 = vst.msk [vmem:[#allocation2 + $0x41] sm:$0xff] %vm790_vm2, %v761_v50  ;;  %v2086_v50 = vmul.f32 %v2000_v61, %v985_v33 }
  0xbd   : > { %v684_v11 = vpop.f32.mrf.mxu3  ;;  %v658_v21 = vadd.f32 %v1820_v34, %v657_v54  ;;  %v787_v54 = vsel %vm719_vm3, %v682_v24, %v755_v39  ;;  %878 = vst.msk [vmem:[#allocation2 + $0xf1] sm:$0xff] %vm790_vm2, %v771_v51  ;;  %v1209_v24 = vld [vmem:[%s2360_s7 + $0x8] sm:$0xff]  ;;  %v918_v39 = vmul.f32 %v2018_v6, %v907_v15  ;;  %v2088_v51 = vld [vmem:[#allocation2 + $0x1f1] sm:$0xff] }
  0xbe   : > { %v606_v57 = vpop.f32.mrf.mxu0  ;;  %v685_v45 = vadd.f32 %v1820_v34, %v684_v11  ;;  %v1010_v11 = vld [vmem:[#allocation2 + $0x21] sm:$0xff]  ;;  %894 = vst.msk [vmem:[#allocation2 + $0x211] sm:$0xff] %vm790_vm2, %v787_v54  ;;  %1228 = vmatpush.msrb.mxu1 %v1209_v24  ;;  %v2093_v54 = vmul.f32 %v2057_v30, %v1038_v31 }
  0xbf   : > { %v636_v63 = vpop.f32.mrf.mxu1  ;;  %v607_v29 = vadd.f32 %v1820_v34, %v606_v57  ;;  %v747_v38 = vmul.f32 %v1829_v35, %v658_v21  ;;  %vm711_vm1 = vcmp.gt.f32.partialorder %v658_v21, 0.0  ;;  %v2060_v32 = vmul.f32 %v1929_v5, %v1010_v11  ;;  %2378 = vst [vmem:[#allocation6_spill] sm:$0xff] %v2088_v51  ;;  %v1040_v31 = vld [vmem:[#allocation2 + $0xe1] sm:$0xff] }
  0xc0   : > { %v637_v40 = vadd.f32 %v1820_v34, %v636_v63  ;;  %v756_v60 = vmul.f32 %v1829_v35, %v685_v45  ;;  %vm720_vm7 = vcmp.gt.f32.partialorder %v685_v45, 0.0 }
  0xc1   : > { %v730_v43 = vmul.f32 %v1829_v35, %v607_v29  ;;  %vm694_vm4 = vcmp.gt.f32.partialorder %v607_v29, 0.0  ;;  %v779_v52 = vsel %vm711_vm1, %v658_v21, %v747_v38 }
  0xc2   : > { %vm704_vm5 = vcmp.gt.f32.partialorder %v637_v40, 0.0  ;;  %v740_v55 = vmul.f32 %v1829_v35, %v637_v40  ;;  %886 = vst.msk [vmem:[#allocation2 + $0x181] sm:$0xff] %vm790_vm2, %v779_v52  ;;  %v788_v13 = vsel %vm720_vm7, %v685_v45, %v756_v60 }
  0xc3   : > { %v762_v58 = vsel %vm694_vm4, %v607_v29, %v730_v43  ;;  %v2073_v43 = vld [vmem:[#allocation2 + $0x171] sm:$0xff]  ;;  %895 = vst.msk [vmem:[#allocation2 + $0x221] sm:$0xff] %vm790_vm2, %v788_v13  ;;  %v986_v13 = vld [vmem:[#allocation2 + $0xe0] sm:$0xff] }
  0xc4   : > { %v660_v10 = vpop.f32.mrf.mxu2  ;;  %v772_v7 = vsel %vm704_vm5, %v637_v40, %v740_v55  ;;  %869 = vst.msk [vmem:[#allocation2 + $0x51] sm:$0xff] %vm790_vm2, %v762_v58  ;;  %v954_v40 = vld [vmem:[#allocation2 + $0x1b1] sm:$0xff]  ;;  %v943_v55 = vmul.f32 %v2005_v62, %v2073_v43 }
  0xc5   : > { %v687_v42 = vpop.f32.mrf.mxu3  ;;  %v661_v44 = vadd.f32 %v1820_v34, %v660_v10  ;;  %879 = vst.msk [vmem:[#allocation2 + $0x101] sm:$0xff] %vm790_vm2, %v772_v7  ;;  %v2114_v7 = vld [vmem:[%s2357_s4 + $0x7] ss:$0 sm:$0xff] }
  0xc6   : > { %v609_v18 = vpop.f32.mrf.mxu0  ;;  %v688_v53 = vadd.f32 %v1820_v34, %v687_v42  ;;  %v2071_v42 = vld [vmem:[%s2357_s4 + $0x2] ss:$0 sm:$0xff] }
  0xc7   : > { %v639_v25 = vpop.f32.mrf.mxu1  ;;  %v610_v46 = vadd.f32 %v1820_v34, %v609_v18  ;;  %vm712_vm6 = vcmp.gt.f32.partialorder %v661_v44, 0.0  ;;  %v748_v59 = vmul.f32 %v1829_v35, %v661_v44  ;;  %v2031_v18 = vld [vmem:[#allocation2 + $0x161] sm:$0xff]  ;;  %v965_v52 = vmul.f32 %v2071_v42, %v954_v40 }
  0xc8   : > { %v640_v47 = vadd.f32 %v1820_v34, %v639_v25  ;;  %v757_v3 = vmul.f32 %v1829_v35, %v688_v53  ;;  %vm721_vm11 = vcmp.gt.f32.partialorder %v688_v53, 0.0  ;;  %v1208_v25 = vld [vmem:[%s2360_s7] sm:$0xff]  ;;  %v2149_v40 = vmul.f32 %v2114_v7, %v2013_v4 }
  0xc9   : > { %v731_v63 = vmul.f32 %v1829_v35, %v610_v46  ;;  %vm695_vm8 = vcmp.gt.f32.partialorder %v610_v46, 0.0  ;;  %v780_v12 = vsel %vm712_vm6, %v661_v44, %v748_v59  ;;  %v2075_v44 = vld [vmem:[#allocation2 + $0x200] sm:$0xff]  ;;  %1229 = vmatpush.msrb.mxu1 %v1208_v25 }
  0xca   : > { %v741_v0 = vmul.f32 %v1829_v35, %v640_v47  ;;  %vm705_vm9 = vcmp.gt.f32.partialorder %v640_v47, 0.0  ;;  %v2052_v29 = vsel %vm721_vm11, %v688_v53, %v757_v3  ;;  %887 = vst.msk [vmem:[#allocation2 + $0x191] sm:$0xff] %vm790_vm2, %v780_v12  ;;  %v1039_v53 = vld [vmem:[#allocation2 + $0xd1] sm:$0xff] }
  0xcb   : > { %v763_v19 = vsel %vm695_vm8, %v610_v46, %v731_v63  ;;  %v938_v46 = vmul.f32 %v2005_v62, %v927_v16  ;;  %v2104_v63 = vld [vmem:[#allocation2 + $0x181] sm:$0xff]  ;;  %v2121_v12 = vmul.f32 %v2057_v30, %v1039_v53  ;;  %896 = vst.msk [vmem:[#allocation2 + $0x231] sm:$0xff] %vm790_vm2, %v2052_v29  ;;  %v1013_v29 = vld [vmem:[#allocation2 + $0x51] sm:$0xff] }
  0xcc   : > { %v663_v41 = vpop.f32.mrf.mxu2  ;;  %v773_v20 = vsel %vm705_vm9, %v640_v47, %v741_v0  ;;  %v922_v47 = vmul.f32 %v2018_v6, %v2047_v27  ;;  %870 = vst.msk [vmem:[#allocation2 + $0x61] sm:$0xff] %vm790_vm2, %v763_v19  ;;  %v2106_v0 = vld [vmem:[#allocation2 + $0x210] sm:$0xff]  ;;  %v2131_v19 = vld [vmem:[%s2357_s4 + $0x6] ss:$0 sm:$0xff]  ;;  %v944_v25 = vmul.f32 %v2005_v62, %v2104_v63 }
  0xcd   : > { %v664_v48 = vadd.f32 %v1820_v34, %v663_v41  ;;  %v942_v41 = vmul.f32 %v2005_v62, %v2031_v18  ;;  %880 = vst.msk [vmem:[#allocation2 + $0x111] sm:$0xff] %vm790_vm2, %v773_v20  ;;  %v946_v3 = vadd.f32 %v938_v46, %v918_v39  ;;  %v1011_v20 = vld [vmem:[#allocation2 + $0x31] sm:$0xff] }
  0xce   : > { %v612_v49 = vpop.f32.mrf.mxu0  ;;  %v987_v39 = vld [vmem:[#allocation2 + $0xf0] sm:$0xff] }
  0xcf   : > { %v613_v56 = vadd.f32 %v1820_v34, %v612_v49  ;;  %v642_v57 = vpop.f32.mrf.mxu1  ;;  %v749_v1 = vmul.f32 %v1829_v35, %v664_v48  ;;  %vm713_vm10 = vcmp.gt.f32.partialorder %v664_v48, 0.0  ;;  %v950_v11 = vadd.f32 %v942_v41, %v922_v47  ;;  %v1012_v41 = vld [vmem:[#allocation2 + $0x41] sm:$0xff] }
  0xd0   : > { %v643_v9 = vadd.f32 %v1820_v34, %v642_v57  ;;  %v2099_v57 = vld [vmem:[#allocation2 + $0x201] sm:$0xff]  ;;  %v2162_v53 = vadd.f32 %v965_v52, %v946_v3 }
  0xd1   : > { %v732_v8 = vmul.f32 %v1829_v35, %v613_v56  ;;  %vm696_vm12 = vcmp.gt.f32.partialorder %v613_v56, 0.0  ;;  %v781_v21 = vsel %vm713_vm10, %v664_v48, %v749_v1  ;;  %v970_v16 = vmul.f32 %v2071_v42, %v2099_v57  ;;  %v2137_v24 = vld [vmem:[#allocation2 + $0x191] sm:$0xff]  ;;  %v988_v3 = vld [vmem:[#allocation2 + $0x100] sm:$0xff] }
  0xd2   : > { %v742_v37 = vmul.f32 %v1829_v35, %v643_v9  ;;  %vm706_vm13 = vcmp.gt.f32.partialorder %v643_v9, 0.0  ;;  %888 = vst.msk [vmem:[#allocation2 + $0x1a1] sm:$0xff] %vm790_vm2, %v781_v21  ;;  %v945_v46 = vmul.f32 %v2005_v62, %v2137_v24 }
  0xd3   : > { %v764_v36 = vsel %vm696_vm12, %v613_v56, %v732_v8  ;;  %v923_v56 = vmul.f32 %v2018_v6, %v2075_v44  ;;  %v969_v8 = vmul.f32 %v2071_v42, %v2088_v51 }
  0xd4   : > { %v666_v10 = vpop.f32.mrf.mxu2  ;;  %v774_v58 = vsel %vm706_vm13, %v643_v9, %v742_v37  ;;  %871 = vst.msk [vmem:[#allocation2 + $0x71] sm:$0xff] %vm790_vm2, %v764_v36  ;;  %v2143_v37 = vld [vmem:[#allocation2 + $0x220] sm:$0xff] }
  0xd5   : > { %v667_v14 = vadd.f32 %v1820_v34, %v666_v10  ;;  %881 = vst.msk [vmem:[#allocation2 + $0x131] sm:$0xff] %vm790_vm2, %v774_v58  ;;  %v977_v47 = vadd.f32 %v969_v8, %v950_v11  ;;  %v1041_v8 = vld [vmem:[#allocation2 + $0xf1] sm:$0xff]  ;;  %v2180_v11 = vmul.f32 %v2131_v19, %v2075_v44 }
  0xd6   : > { %v615_v23 = vpop.f32.mrf.mxu0  ;;  %v989_v44 = vld [vmem:[#allocation2 + $0x110] sm:$0xff] }
  0xd7   : > { %v616_v28 = vadd.f32 %v1820_v34, %v615_v23  ;;  %v645_v38 = vpop.f32.mrf.mxu1  ;;  %v750_v45 = vmul.f32 %v1829_v35, %v667_v14  ;;  %vm714_vm14 = vcmp.gt.f32.partialorder %v667_v14, 0.0  ;;  %v924_v23 = vmul.f32 %v2018_v6, %v2106_v0 }
  0xd8   : > { %v646_v49 = vadd.f32 %v1820_v34, %v645_v38  ;;  %v2145_v38 = vld [vmem:[#allocation2 + $0x211] sm:$0xff] }
  0xd9   : > { %v733_v48 = vmul.f32 %v1829_v35, %v616_v28  ;;  %vm697_vm15 = vcmp.gt.f32.partialorder %v616_v28, 0.0  ;;  %v782_v1 = vsel %vm714_vm14, %v667_v14, %v750_v45  ;;  %v925_v45 = vmul.f32 %v2018_v6, %v2143_v37 }
  0xda   : > { %v743_v59 = vmul.f32 %v1829_v35, %v646_v49  ;;  %vm707_vm0 = vcmp.gt.f32.partialorder %v646_v49, 0.0  ;;  %889 = vst.msk [vmem:[#allocation2 + $0x1c1] sm:$0xff] %vm790_vm2, %v782_v1  ;;  %vm1237_vm14 = vcmask 64512  }
  0xdb   : > { %v765_v9 = vsel %vm697_vm15, %v616_v28, %v733_v48  ;;  %v951_v28 = vadd.f32 %v943_v55, %v923_v56  ;;  %v997_v48 = vmul.f32 %v2000_v61, %v986_v13  ;;  %v2164_v55 = vld [vmem:[#allocation2 + $0x221] sm:$0xff]  ;;  %v2167_v56 = vmul.f32 %v2057_v30, %v1040_v31  ;;  %v1015_v31 = vld [vmem:[#allocation2 + $0x71] sm:$0xff] }
  0xdc   : > { %v669_v60 = vpop.f32.mrf.mxu2  ;;  %v775_v21 = vsel %vm707_vm0, %v646_v49, %v743_v59  ;;  %872 = vst.msk [vmem:[#allocation2 + $0x81] sm:$0xff] %vm790_vm2, %v765_v9  ;;  %v2159_v49 = vmul.f32 %v1929_v5, %v1011_v20  ;;  %v952_v59 = vadd.f32 %v944_v25, %v924_v23  ;;  %v2176_v9 = vmul.f32 %v1929_v5, %v1012_v41 }
  0xdd   : > { %v670_v2 = vadd.f32 %v1820_v34, %v669_v60  ;;  %882 = vst.msk [vmem:[#allocation2 + $0x141] sm:$0xff] %vm790_vm2, %v775_v21  ;;  %v971_v60 = vmul.f32 %v2071_v42, %v2145_v38  ;;  %v978_v1 = vadd.f32 %v970_v16, %v951_v28  ;;  %v2184_v13 = vmul.f32 %v2114_v7, %v2031_v18  ;;  %v1014_v21 = vld [vmem:[#allocation2 + $0x61] sm:$0xff]  ;;  %v2192_v18 = vld [vmem:[#allocation2 + $0x131] sm:$0xff] }
  0xde   : > { %v618_v10 = vpop.f32.mrf.mxu0  ;;  %v972_v16 = vmul.f32 %v2071_v42, %v2164_v55  ;;  %v1005_v20 = vadd.f32 %v997_v48, %v977_v47  ;;  %v1024_v23 = vmul.f32 %v1929_v5, %v1013_v29  ;;  %v999_v41 = vmul.f32 %v2000_v61, %v988_v3 }
  0xdf   : > { %vm715_vm1 = vcmp.gt.f32.partialorder %v670_v2, 0.0  ;;  %v751_v14 = vmul.f32 %v1829_v35, %v670_v2  ;;  %v619_v15 = vadd.f32 %v1820_v34, %v618_v10  ;;  %v1042_v10 = vld [vmem:[#allocation2 + $0x101] sm:$0xff]  ;;  %vm1328_vm15 = vcmask 523264  }
  0xe1   : > { %v783_v33 = vsel %vm715_vm1, %v670_v2, %v751_v14  ;;  %vm698_vm3 = vcmp.gt.f32.partialorder %v619_v15, 0.0  ;;  %v734_v36 = vmul.f32 %v1829_v35, %v619_v15  ;;  %v998_v2 = vmul.f32 %v2000_v61, %v987_v39 }
  0xe2   : > { %890 = vst.msk [vmem:[#allocation2 + $0x1d1] sm:$0xff] %vm790_vm2, %v783_v33  ;;  %v1052_v33 = vmul.f32 %v2057_v30, %v1041_v8  ;;  %v979_v39 = vadd.f32 %v971_v60, %v952_v59  ;;  %v1026_v59 = vmul.f32 %v1929_v5, %v1015_v31  ;;  %v1032_v60 = vadd.f32 %v1024_v23, %v1005_v20 }
  0xe3   : > { %v766_v4 = vsel %vm698_vm3, %v619_v15, %v734_v36  ;;  %v953_v15 = vadd.f32 %v945_v46, %v925_v45  ;;  %v908_v36 = vld [vmem:[#allocation2 + $0x1c0] sm:$0xff]  ;;  %v1006_v45 = vadd.f32 %v998_v2, %v978_v1  ;;  %v1053_v46 = vmul.f32 %v2057_v30, %v1042_v10  ;;  %v1043_v1 = vld [vmem:[#allocation2 + $0x111] sm:$0xff] }
  0xe4   : > { %v672_v58 = vpop.f32.mrf.mxu2  ;;  %873 = vst.msk [vmem:[#allocation2 + $0xa1] sm:$0xff] %vm790_vm2, %v766_v4  ;;  %v1025_v4 = vmul.f32 %v1929_v5, %v1014_v21  ;;  %v1016_v8 = vld [vmem:[#allocation2 + $0x81] sm:$0xff]  ;;  %v939_v2 = vmul.f32 %v2005_v62, %v2192_v18  ;;  %v1007_v20 = vadd.f32 %v999_v41, %v979_v39  ;;  %v2215_v21 = vmul.f32 %v2131_v19, %v2047_v27 }
  0xe5   : > { %v673_v52 = vadd.f32 %v1820_v34, %v672_v58  ;;  %v980_v29 = vadd.f32 %v972_v16, %v953_v15  ;;  %v1000_v58 = vmul.f32 %v2000_v61, %v989_v44  ;;  %v1080_v23 = vmul.f32 %v2131_v19, %v2106_v0 }
  0xe6   : > { %v621_v14 = vpop.f32.mrf.mxu0  ;;  %v1027_v44 = vmul.f32 %v1929_v5, %v1016_v8  ;;  %v1033_v31 = vadd.f32 %v1025_v4, %v1006_v45  ;;  %v1034_v41 = vadd.f32 %v1026_v59, %v1007_v20  ;;  %v1059_v27 = vadd.f32 %v2167_v56, %v1032_v60  ;;  %v1071_v4 = vld [vmem:[#allocation2 + $0x230] sm:$0xff] }
  0xe7   : > { %vm716_vm4 = vcmp.gt.f32.partialorder %v673_v52, 0.0  ;;  %v752_v25 = vmul.f32 %v1829_v35, %v673_v52  ;;  %v622_v28 = vadd.f32 %v1820_v34, %v621_v14  ;;  %v2198_v34 = vld [vmem:[#allocation2 + $0x141] sm:$0xff]  ;;  %v1008_v0 = vadd.f32 %v1000_v58, %v980_v29 }
  0xe8   : > { %v1107_v8 = vmul.f32 %v2114_v7, %v2073_v43  ;;  %v1060_v58 = vadd.f32 %v1052_v33, %v1033_v31 }
  0xe9   : > { %v784_v47 = vsel %vm716_vm4, %v673_v52, %v752_v25  ;;  %vm699_vm5 = vcmp.gt.f32.partialorder %v622_v28, 0.0  ;;  %v735_v48 = vmul.f32 %v1829_v35, %v622_v28  ;;  %v919_v52 = vmul.f32 %v2018_v6, %v908_v36  ;;  %v909_v3 = vld [vmem:[#allocation2 + $0x1d0] sm:$0xff]  ;;  %v955_v25 = vld [vmem:[#allocation2 + $0x1c1] sm:$0xff] }
  0xea   : > { %891 = vst.msk [vmem:[#allocation2 + $0x1e1] sm:$0xff] %vm790_vm2, %v784_v47  ;;  %v940_v35 = vmul.f32 %v2005_v62, %v2198_v34  ;;  %v2208_v10 = vld [vmem:[#allocation2 + $0x1d1] sm:$0xff]  ;;  %v920_v15 = vmul.f32 %v2018_v6, %v909_v3  ;;  %v966_v5 = vmul.f32 %v2071_v42, %v955_v25  ;;  %v1035_v29 = vadd.f32 %v1027_v44, %v1008_v0 }
  0xeb   : > { %v767_v14 = vsel %vm699_vm5, %v622_v28, %v735_v48  ;;  %v982_v16 = vld [vmem:[#allocation2 + $0xa0] sm:$0xff]  ;;  %v1054_v28 = vmul.f32 %v2057_v30, %v1043_v1  ;;  %v967_v48 = vmul.f32 %v2071_v42, %v2208_v10  ;;  %v1108_v1 = vmul.f32 %v2114_v7, %v2104_v63 }
  0xec   : > { %874 = vst.msk [vmem:[#allocation2 + $0xb1] sm:$0xff] %vm790_vm2, %v767_v14  ;;  %v993_v62 = vmul.f32 %v2000_v61, %v982_v16  ;;  %v948_v47 = vadd.f32 %v940_v35, %v920_v15  ;;  %v1036_v39 = vld [vmem:[#allocation2 + $0xa1] sm:$0xff]  ;;  %v947_v14 = vadd.f32 %v939_v2, %v919_v52  ;;  %v1081_v16 = vmul.f32 %v2131_v19, %v2143_v37 }
  0xed   : > { %v1047_v59 = vmul.f32 %v2057_v30, %v1036_v39  ;;  %v1061_v52 = vadd.f32 %v1053_v46, %v1034_v41  ;;  %v1075_v35 = vmul.f32 %v2131_v19, %v908_v36  ;;  %v1076_v63 = vmul.f32 %v2131_v19, %v909_v3  ;;  %v1516_v3 = vld [vmem:[%s2357_s4 + $0x8] ss:$0 sm:$0xff] }
  0xee   : > { %v1001_v51 = vadd.f32 %v993_v62, %v2162_v53  ;;  %v975_v45 = vadd.f32 %v967_v48, %v948_v47  ;;  %v974_v15 = vadd.f32 %v966_v5, %v947_v14  ;;  %v1082_v62 = vmul.f32 %v2131_v19, %v1071_v4 }
  0xef   : > { %v1087_v36 = vadd.f32 %v2180_v11, %v1059_v27  ;;  %v1103_v44 = vmul.f32 %v2114_v7, %v2192_v18  ;;  %v1088_v48 = vadd.f32 %v1080_v23, %v1060_v58  ;;  %v1134_v5 = vmul.f32 %v1516_v3, %v2099_v57 }
  0xf0   : > { %v1028_v53 = vadd.f32 %v1953_v22, %v1001_v51  ;;  %v1003_v2 = vadd.f32 %v2029_v17, %v975_v45  ;;  %v1062_v17 = vadd.f32 %v1054_v28, %v1035_v29  ;;  %v1130_v28 = vmul.f32 %v1516_v3, %v955_v25 }
  0xf1   : > { %v910_v56 = vld [vmem:[#allocation2 + $0x1e0] sm:$0xff]  ;;  %v1115_v0 = vadd.f32 %v1107_v8, %v1087_v36  ;;  %v1116_v25 = vadd.f32 %v1108_v1, %v1088_v48  ;;  %v1135_v57 = vmul.f32 %v1516_v3, %v2145_v38  ;;  %v1136_v29 = vmul.f32 %v1516_v3, %v2164_v55 }
  0xf2   : > { %v957_v60 = vld [vmem:[#allocation2 + $0x1e1] sm:$0xff]  ;;  %v921_v37 = vmul.f32 %v2018_v6, %v910_v56  ;;  %v1055_v20 = vadd.f32 %v1047_v59, %v1028_v53  ;;  %v1030_v6 = vadd.f32 %v2159_v49, %v1003_v2  ;;  %v1089_v49 = vadd.f32 %v1081_v16, %v1061_v52  ;;  %v1126_v59 = vld [vmem:[#allocation2 + $0x231] sm:$0xff] }
  0xf3   : > { %v983_v43 = vld [vmem:[#allocation2 + $0xb0] sm:$0xff]  ;;  %v968_v22 = vmul.f32 %v2071_v42, %v957_v60  ;;  %v1090_v14 = vadd.f32 %v1082_v62, %v1062_v17  ;;  %v1132_v16 = vmul.f32 %v1516_v3, %v957_v60  ;;  %v1142_v58 = vadd.f32 %v1134_v5, %v1115_v0 }
  0xf4   : > { %v949_v47 = vadd.f32 %v2045_v26, %v921_v37  ;;  %v994_v51 = vmul.f32 %v2000_v61, %v983_v43  ;;  %v1037_v33 = vld [vmem:[#allocation2 + $0xb1] sm:$0xff]  ;;  %v1083_v46 = vadd.f32 %v1075_v35, %v1055_v20  ;;  %v1057_v42 = vadd.f32 %v2093_v54, %v1030_v6 }
  0xf5   : > { %v1077_v61 = vmul.f32 %v2131_v19, %v910_v56  ;;  %v1048_v41 = vmul.f32 %v2057_v30, %v1037_v33  ;;  %v1099_v19 = vld [vmem:[#allocation2 + $0x1a1] sm:$0xff]  ;;  %v1517_v30 = vld [vmem:[%s2358_s5] ss:$0 sm:$0xff]  ;;  %v1137_v2 = vmul.f32 %v1516_v3, %v1126_v59  ;;  %v1143_v52 = vadd.f32 %v1135_v57, %v1116_v25 }
  0xf6   : > { %v1002_v31 = vadd.f32 %v994_v51, %v974_v15  ;;  %v976_v26 = vadd.f32 %v968_v22, %v949_v47  ;;  %v1111_v39 = vadd.f32 %v1103_v44, %v1083_v46  ;;  %v1110_v60 = vmul.f32 %v2114_v7, %v1099_v19 }
  0xf7   : > { %v1085_v27 = vadd.f32 %v1077_v61, %v1057_v42  ;;  %v1155_v22 = vadd.f32 %v1517_v30, %v1143_v52 }
  0xf8   : > { %v1004_v11 = vadd.f32 %v2086_v50, %v976_v26  ;;  %v1029_v18 = vadd.f32 %v2060_v32, %v1002_v31  ;;  %v1138_v45 = vadd.f32 %v1130_v28, %v1111_v39  ;;  %v1104_v32 = vmul.f32 %v2114_v7, %v2198_v34 }
  0xf9   : > { %v1113_v23 = vadd.f32 %v2149_v40, %v1085_v27  ;;  %v1109_v50 = vmul.f32 %v2114_v7, %v2137_v24  ;;  %v1131_v24 = vmul.f32 %v1516_v3, %v2208_v10  ;;  %v1118_v38 = vadd.f32 %v1110_v60, %v1090_v14  ;;  %v2379_v7 = vld [vmem:[#allocation6_spill] sm:$0xff]  ;;  %v1210_v60 = vld [vmem:[%s2361_s8] sm:$0x1] }
  0xfa   : > { %v1031_v54 = vadd.f32 %v2176_v9, %v1004_v11  ;;  %v1056_v4 = vadd.f32 %v1048_v41, %v1029_v18  ;;  %v1150_v40 = vadd.f32 %v1517_v30, %v1138_v45  ;;  %v1133_v15 = vmul.f32 %v1516_v3, %v2379_v7  ;;  %v1275_v7 = vld [vmem:[%s2365_s12] sm:$0xff] }
  0xfb   : > { %v1140_v56 = vadd.f32 %v1132_v16, %v1113_v23  ;;  %v1117_v53 = vadd.f32 %v1109_v50, %v1089_v49  ;;  %v1145_v47 = vadd.f32 %v1137_v2, %v1118_v38  ;;  %vm1163_vm11 = vcmp.gt.f32.partialorder %v1155_v22, 0.0 }
  0xfc   : > { %v1058_v9 = vadd.f32 %v2121_v12, %v1031_v54  ;;  %v1084_v8 = vadd.f32 %v1076_v63, %v1056_v4  ;;  %v1518_v12 = vld [vmem:[%s2359_s6] ss:$0 sm:$0xff]  ;;  %v1154_v63 = vadd.f32 %v1517_v30, %v1142_v58  ;;  %vm1158_vm6 = vcmp.gt.f32.partialorder %v1150_v40, 0.0 }
  0xfd   : > { %v1152_v1 = vadd.f32 %v1517_v30, %v1140_v56  ;;  %v1170_v55 = vmul.f32 %v1518_v12, %v1150_v40  ;;  %v1144_v20 = vadd.f32 %v1136_v29, %v1117_v53  ;;  %v1157_v42 = vadd.f32 %v1517_v30, %v1145_v47  ;;  %v1274_v47 = vld [vmem:[%s2364_s11] sm:$0xff] }
  0xfe   : > { %v1086_v34 = vadd.f32 %v2215_v21, %v1058_v9  ;;  %v1112_v37 = vadd.f32 %v1104_v32, %v1084_v8  ;;  %v1174_v46 = vmul.f32 %v1518_v12, %v1154_v63  ;;  %vm1162_vm10 = vcmp.gt.f32.partialorder %v1154_v63, 0.0 }
  0xff   : > { %v1172_v10 = vmul.f32 %v1518_v12, %v1152_v1  ;;  %vm1160_vm7 = vcmp.gt.f32.partialorder %v1152_v1, 0.0  ;;  %v2276_v33 = vsel %vm1158_vm6, %v1150_v40, %v1170_v55  ;;  %v1156_v17 = vadd.f32 %v1517_v30, %v1144_v20 }
 0x100   : > { %v1114_v35 = vadd.f32 %v2184_v13, %v1086_v34  ;;  %v1139_v43 = vadd.f32 %v1131_v24, %v1112_v37  ;;  %v1235_v13 = vld [vmem:[%s2362_s9] sm:$0xff]  ;;  %v1186_v31 = vsel %vm790_vm2, %v2276_v33, 0.0  ;;  %v1175_v61 = vmul.f32 %v1518_v12, %v1155_v22 }
 0x101   : > { %1256 = vmatpush.msrb.mxu2 %v1235_v13  ;;  %v2283_v3 = vsel %vm1160_vm7, %v1152_v1, %v1172_v10  ;;  %v1176_v28 = vmul.f32 %v1518_v12, %v1156_v17  ;;  %v1182_v41 = vsel %vm1162_vm10, %v1154_v63, %v1174_v46  ;;  %vm1164_vm12 = vcmp.gt.f32.partialorder %v1156_v17, 0.0  ;;  %v1236_v34 = vld [vmem:[%s2363_s10] sm:$0x1] }
 0x102   : > { %v1141_v21 = vadd.f32 %v1133_v15, %v1114_v35  ;;  %v1151_v62 = vadd.f32 %v1517_v30, %v1139_v43  ;;  %v1189_v39 = vsel %vm790_vm2, %v2283_v3, 0.0  ;;  %v1177_v27 = vmul.f32 %v1518_v12, %v1157_v42 }
 0x103   : > { %v1183_v14 = vsel %vm1163_vm11, %v1155_v22, %v1175_v61  ;;  %vm1165_vm13 = vcmp.gt.f32.partialorder %v1157_v42, 0.0  ;;  %v1193_v5 = vsel %vm790_vm2, %v1182_v41, 0.0  ;;  %v1184_v45 = vsel %vm1164_vm12, %v1156_v17, %v1176_v28 }
 0x104   : > { %v1153_v51 = vadd.f32 %v1517_v30, %v1141_v21  ;;  %vm1159_vm8 = vcmp.gt.f32.partialorder %v1151_v62, 0.0  ;;  %v1171_v6 = vmul.f32 %v1518_v12, %v1151_v62  ;;  %v1195_v4 = vsel %vm790_vm2, %v1183_v14, 0.0 }
 0x105   : > { %v1185_v19 = vsel %vm1165_vm13, %v1157_v42, %v1177_v27  ;;  %v1197_v16 = vsel %vm790_vm2, %v1184_v45, 0.0  ;;  %v1584_v15 = vmov 0  }
 0x106   : > { %vm1161_vm9 = vcmp.gt.f32.partialorder %v1153_v51, 0.0  ;;  %v1173_v36 = vmul.f32 %v1518_v12, %v1153_v51  ;;  %v2281_v44 = vsel %vm1159_vm8, %v1151_v62, %v1171_v6  ;;  %v1199_v32 = vsel %vm790_vm2, %v1185_v19, 0.0  ;;  %1505 = vset.pattern.permute.xlu0 %v1584_v15 }
 0x107   : > { %v1187_v26 = vsel %vm790_vm2, %v2281_v44, 0.0  ;;  %1278 = vperm.xlu0 %1505, %v1275_v7  }
 0x108   : > { %v1181_v48 = vsel %vm1161_vm9, %v1153_v51, %v1173_v36  ;;  %v1188_v49 = vadd.f32 %v1187_v26, %v1186_v31 }
 0x109   : > { %v1191_v18 = vsel %vm790_vm2, %v1181_v48, 0.0 }
 0x10a   : > { %v1190_v11 = vadd.f32 %v1189_v39, %v1188_v49 }
 0x10c   : > { %v1192_v0 = vadd.f32 %v1191_v18, %v1190_v11 }
 0x10e   : > { %v1194_v54 = vadd.f32 %v1193_v5, %v1192_v0 }
 0x110   : > { %v1196_v23 = vadd.f32 %v1195_v4, %v1194_v54 }
 0x112   : > { %v1198_v30 = vadd.f32 %v1197_v16, %v1196_v23 }
 0x114   : > { %v1200_v50 = vadd.f32 %v1199_v32, %v1198_v30 }
 0x116   : > { %v1201_v25 = vrot.slane %v1200_v50, 4 }
 0x118   : > { %v1202_v57 = vadd.f32 %v1201_v25, %v1200_v50 }
 0x11a   : > { %v1203_v9 = vrot.slane %v1202_v57, 2 }
 0x11c   : > { %v1204_v8 = vadd.f32 %v1203_v9, %v1202_v57 }
 0x11e   : > { %v1205_v59 = vrot.slane %v1204_v8, 1 }
 0x120   : > { %v1206_v56 = vadd.f32 %v1205_v59, %v1204_v8 }
 0x122   : > { %v1207_v40 = vmul.f32 0.015625, %v1206_v56 }
 0x124   : > { %1445 = vmatmul.msk.f32.vlgmr.msrb.gmra.mxu1 %vm790_vm2, %v1207_v40 }
 0x179   : > { %v1279_v22 = vpop.permute.xlu0 %1278 }
 0x1a1   : > { %v1231_v53 = vpop.f32.mrf.mxu1 }
 0x1a2   : > { %v1232_v29 = vadd.f32 %v1231_v53, %v1210_v60 }
 0x1a4   : > { %v1234_v58 = vmax.f32 %v1232_v29, 0.0 }
 0x1a6   : > { %1446 = vmatmul.msk.f32.vlgmr.msrb.gmra.mxu2 %vm1237_vm14, %v1234_v58 }
 0x229   : > { %v1258_v37 = vpop.f32.mrf.mxu2 }
 0x22a   : > { %v1259_v24 = vadd.f32 %v1258_v37, %v1236_v34 }
 0x22c   : > { %v1261_v1 = vadd.f32 3.0, %v1259_v24 }
 0x22e   : > { %v1262_v12 = vmax.f32 %v1261_v1, 0.0 }
 0x230   : > { %v1263_v38 = vmin.f32 %v1262_v12, 6.0 }
 0x232   : > { %v1264_v2 = vmul.f32 0.16666667, %v1263_v38 }
 0x234   : > { %v1265_v52 = vperm.slane %v1264_v2, 0 }
 0x236   : > { %v1273_v35 = vmul.f32 %v1265_v52, %v1185_v19  ;;  %v1272_v43 = vmul.f32 %v1265_v52, %v1184_v45  ;;  %v1271_v55 = vmul.f32 %v1265_v52, %v1183_v14  ;;  %v1270_v20 = vmul.f32 %v1265_v52, %v1182_v41 }
 0x237   : > { %v1269_v63 = vmul.f32 %v1265_v52, %v1181_v48  ;;  %v1268_v21 = vmul.f32 %v1265_v52, %v2283_v3  ;;  %v1267_v62 = vmul.f32 %v1265_v52, %v2281_v44  ;;  %v1266_v10 = vmul.f32 %v1265_v52, %v2276_v33 }
 0x238   : > { %1447 = vmatpush.xpose.msk.msrb.mxu3 %vm790_vm2, %v1273_v35 }
 0x23c   : > { %1448 = vmatpush.xpose.msk.msrb.mxu3 %vm790_vm2, %v1272_v43 }
 0x240   : > { %1449 = vmatpush.xpose.msk.msrb.mxu3 %vm790_vm2, %v1271_v55 }
 0x244   : > { %1450 = vmatpush.xpose.msk.msrb.mxu3 %vm790_vm2, %v1270_v20 }
 0x248   : > { %1451 = vmatpush.xpose.msk.msrb.mxu3 %vm790_vm2, %v1269_v63 }
 0x24c   : > { %1452 = vmatpush.xpose.msk.msrb.mxu3 %vm790_vm2, %v1268_v21 }
 0x250   : > { %1453 = vmatpush.xpose.msk.msrb.mxu3 %vm790_vm2, %v1267_v62 }
 0x254   : > { %1454 = vmatpush.xpose.msk.msrb.mxu3 %vm790_vm2, %v1266_v10 }
 0x257   : > { %1455 = vmatmul.msk.f32.vlgmr.msrb.gmra.mxu3 %vm790_vm2, %v1274_v47 }
 0x2da   : > { %v1325_v51 = vpop.f32.mrf.mxu3 }
 0x2db   : > { %v1326_v6 = vadd.f32 %v1325_v51, %v1279_v22 }
 0x2dd   : > { %1329 = vst.msk [vmem:[%s433_s0] sm:$0xff] %vm1328_vm15, %v1326_v6 }
 0x2de   : > { %1546 = shalt.err (!%p1543_p3)
}
 0x2df   : > { %1464 = dma.vmem_to_hbm [thread:$0]  (%p1693_p5), %s1344_s1, 128, %s1346_s2, %s1331_s30  }
 0x2e0 PF: > { %p1470_p4 = scmp.ge.s32.totalorder %s1581_s28, 2  ;;  %s1357_s0 = sand.u32 1, %s1569_s25  }
 0x2e1   : > { %s1358_s16 = scalar_lea.sflag [#allocation4], %s1357_s0 }
 0x2e2   : > { %p1467_p7 = pnand %p1470_p4, %p1697_p6 }
 0x2e4   : > { %p1468_p8 = pneg %p1467_p7 }
 0x2e6   : > { %1564 = dma.done.wait (%p1468_p8), %s1358_s16, 128  }
 0x2e7   : > { %1566 = vsyncadd (%p1468_p8), %s1358_s16, 4294967168  ;;  %p23_p9 = scmp.ge.s32.totalorder %s1680_s14, 4   ;;  %s2380_s25 = smov %s1573_s26 }
 0x2e8   : > { %s2381_s26 = smov %s1577_s27  ;;  %s2382_s27 = smov %s1691_s17 }
 0x2e9   : > { %s2383_s28 = smov %s1680_s14  ;;  %25 = sbr.rel (!%p23_p9) target bundleno = 8 (0x8), region = 113 }
 0x2ee   :  { %1364 = vsyncpa [#allocation4], 1 }
 0x2ef   :  { %1366 = vsyncpa [#allocation4 + $0x1], 1 }

</bundles_post_ra>
